<compile_context>
chip_gen: v5e
topology: v5e:2x2
jax: 0.10.0
libtpu: 0.0.40
codegen_flags: <defaults>
</compile_context>

<pallas_src>
import functools

import jax
import jax.numpy as jnp
from jax import lax
from jax.experimental import pallas as pl
from jax.experimental.pallas import tpu as pltpu


# --------------------------------------------------------------------------- #
# Tile-size selection for the streaming path.
# --------------------------------------------------------------------------- #
def _choose_m_tile(m, c, target_bytes=(1 << 20), max_lanes=4096):
    """Lane-tile targeting ~1 MiB per (C, tm) f32 block, multiple of 128 lanes."""
    per_lane = max(c, 1) * 4                       # f32 accumulation copies dominate
    tm = (target_bytes // per_lane) // 128 * 128
    tm = int(max(128, min(tm, max_lanes)))
    m_ceil = ((m + 127) // 128) * 128
    tm = min(tm, m_ceil)
    # Prefer an exact divisor (skips the edge-tile mask) if one exists nearby.
    if m % tm != 0 and m % 128 == 0:
        cand = tm
        while cand > 128 and m % cand != 0:
            cand -= 128
        if m % cand == 0 and cand >= max(512, tm // 4):
            tm = cand
    return tm


# --------------------------------------------------------------------------- #
# Path A: single-pass kernel — one batch's whole (C, M) slab lives in VMEM.
# HBM traffic: 1 read + 1 write of x (optimal for this op).
# --------------------------------------------------------------------------- #
def _sca_single_pass_kernel(x_ref, w1_ref, w2_ref, o_ref, mask_ref, *, inv_m):
    x = x_ref[0].astype(jnp.float32)                                   # (C, M)
    pooled = jnp.sum(x, axis=-1, keepdims=True) * inv_m                # (C, 1)
    h = jnp.dot(w1_ref[...], pooled, preferred_element_type=jnp.float32)
    h = jnp.maximum(h, 0.0)                                            # ReLU
    y = jnp.dot(w2_ref[...], h, preferred_element_type=jnp.float32)    # (C, 1)
    # fc ends with Sigmoid AND the forward applies torch.sigmoid(y) again.
    m = jax.nn.sigmoid(jax.nn.sigmoid(y))
    mask_ref[0] = m
    o_ref[0] = (x * m).astype(o_ref.dtype)


# --------------------------------------------------------------------------- #
# Path B: two-phase streaming kernel (pool pass + scale pass over lane tiles).
# --------------------------------------------------------------------------- #
def _sca_two_phase_kernel(x_ref, w1_ref, w2_ref, o_ref, mask_ref, *,
                          inv_m, m_total, tm, need_mask):
    """x_ref: (1, C, tm); w1_ref: (Cr, C); w2_ref: (C, Cr);
       o_ref: (1, C, tm); mask_ref: (1, C, 1) -- doubles as the pooled-sum accumulator."""
    phase = pl.program_id(1)
    j = pl.program_id(2)

    # ---- phase 0: global average pool (accumulate per-channel sums) --------
    @pl.when((phase == 0) & (j == 0))
    def _init():
        mask_ref[...] = jnp.zeros_like(mask_ref)

    @pl.when(phase == 0)
    def _accumulate():
        x = x_ref[0].astype(jnp.float32)                               # (C, tm)
        if need_mask:
            # Partial edge tile: zero the stale/garbage lanes beyond M.
            lane = lax.broadcasted_iota(jnp.int32, x.shape, 1)
            x = jnp.where(lane < (m_total - j * tm), x, 0.0)
        mask_ref[0] += jnp.sum(x, axis=-1, keepdims=True)              # (C, 1)

    # ---- phase 1, first tile: finish mean, SE MLP, double sigmoid ----------
    @pl.when((phase == 1) & (j == 0))
    def _finalize_mask():
        pooled = mask_ref[0] * inv_m                                   # (C, 1)
        h = jnp.dot(w1_ref[...], pooled, preferred_element_type=jnp.float32)
        h = jnp.maximum(h, 0.0)                                        # ReLU, (Cr, 1)
        y = jnp.dot(w2_ref[...], h, preferred_element_type=jnp.float32)
        mask_ref[0] = jax.nn.sigmoid(jax.nn.sigmoid(y))

    # ---- phase 1: broadcast-scale this lane tile ----------------------------
    @pl.when(phase == 1)
    def _scale():
        o_ref[0] = (x_ref[0].astype(jnp.float32) * mask_ref[0]).astype(o_ref.dtype)
        # Pallas masks the writeback of the partial edge tile automatically.


# --------------------------------------------------------------------------- #
# Wrapper.
# --------------------------------------------------------------------------- #
def spatial_crop_attention(x, w1, w2, *, m_tile=None,
                           max_single_pass_bytes=(1 << 20)):
    """Fused SpatialCropAttention forward.

    x : (B, C, T, H, W)       native PyTorch NCDHW layout (no transposes)
    w1: (C // reduction, C)   fc[0].weight  (no bias)
    w2: (C, C // reduction)   fc[2].weight  (no bias)
    Returns (x * mask, mask) with mask of shape (B, C, 1).
    """
    B, C, T, H, W = x.shape
    M = T * H * W
    Cr = w1.shape[0]
    assert w1.shape == (Cr, C) and w2.shape == (C, Cr)

    x3 = x.reshape(B, C, M)      # contiguous trailing-dim collapse: no data movement
    out_shapes = (
        jax.ShapeDtypeStruct((B, C, M), x.dtype),
        jax.ShapeDtypeStruct((B, C, 1), jnp.float32),
    )

    per_batch_f32_bytes = C * M * 4
    if m_tile is None and per_batch_f32_bytes <= max_single_pass_bytes:
        # ---- Path A: whole per-batch slab resident in VMEM (1 read + 1 write)
        out, mask = pl.pallas_call(
            functools.partial(_sca_single_pass_kernel, inv_m=1.0 / M),
            out_shape=out_shapes,
            grid=(B,),
            in_specs=[
                pl.BlockSpec((1, C, M), lambda b: (b, 0, 0)),
                pl.BlockSpec((Cr, C), lambda b: (0, 0)),    # weights stay resident
                pl.BlockSpec((C, Cr), lambda b: (0, 0)),
            ],
            out_specs=(
                pl.BlockSpec((1, C, M), lambda b: (b, 0, 0)),
                pl.BlockSpec((1, C, 1), lambda b: (b, 0, 0)),
            ),
            compiler_params=pltpu.CompilerParams(dimension_semantics=("parallel",)),
        )(x3, w1, w2)
        return out.reshape(B, C, T, H, W), mask

    # ---- Path B: two-phase streaming over lane tiles -------------------------
    tm = m_tile if m_tile is not None else _choose_m_tile(M, C)
    tm = int(max(128, (tm // 128) * 128))           # keep lane-dense tiles
    km = pl.cdiv(M, tm)
    need_mask = (M % tm) != 0

    out, mask = pl.pallas_call(
        functools.partial(_sca_two_phase_kernel, inv_m=1.0 / M, m_total=M,
                          tm=tm, need_mask=need_mask),
        out_shape=out_shapes,
        grid=(B, 2, km),         # (batch, phase, M tiles); phase 0 = pool, 1 = scale
        in_specs=[
            pl.BlockSpec((1, C, tm), lambda b, p, j: (b, 0, j)),
            pl.BlockSpec((Cr, C), lambda b, p, j: (0, 0)),   # weights stay resident
            pl.BlockSpec((C, Cr), lambda b, p, j: (0, 0)),
        ],
        out_specs=(
            # Block index pinned to 0 throughout phase 0 -> no garbage writebacks;
            # phase 1 walks the tiles and streams them out lane-dense (tm >= 128).
            pl.BlockSpec((1, C, tm), lambda b, p, j: (b, 0, j * p)),
            # (B, C, 1) mask output is resident per batch and doubles as accumulator.
            pl.BlockSpec((1, C, 1), lambda b, p, j: (b, 0, 0)),
        ),
        compiler_params=pltpu.CompilerParams(
            dimension_semantics=("parallel", "arbitrary", "arbitrary")),
    )(x3, w1, w2)

    # NOTE: torch stores mask[0] as a host-side numpy attribute (side effect only);
    # we return the mask alongside the scaled tensor instead.
    return out.reshape(B, C, T, H, W), mask


# --------------------------------------------------------------------------- #
# Pure-JAX reference for correctness checking.
# --------------------------------------------------------------------------- #
def spatial_crop_attention_ref(x, w1, w2):
    b, c = x.shape[:2]
    pooled = jnp.mean(x.reshape(b, c, -1), axis=-1)                   # (B, C)
    y = jax.nn.sigmoid(jnp.maximum(pooled @ w1.T, 0.0) @ w2.T)        # fc(...) incl. Sigmoid
    mask = jax.nn.sigmoid(y)                                          # second sigmoid
    return x * mask[:, :, None, None, None], mask


if __name__ == "__main__":
    reduction = 8

    def run_case(B, C, T, H, W, key, **kw):
        Cr = C // reduction
        kx, k1, k2 = jax.random.split(key, 3)
        x = jax.random.normal(kx, (B, C, T, H, W), jnp.float32)
        w1 = 0.1 * jax.random.normal(k1, (Cr, C), jnp.float32)   # fc[0].weight
        w2 = 0.1 * jax.random.normal(k2, (C, Cr), jnp.float32)   # fc[2].weight

        fwd = jax.jit(functools.partial(spatial_crop_attention, **kw))
        out, mask = fwd(x, w1, w2)
        out = jax.block_until_ready(out)
        mask = jax.block_until_ready(mask)

        ref_out, ref_mask = spatial_crop_attention_ref(x, w1, w2)
        assert out.shape == (B, C, T, H, W), out.shape
        assert mask.shape == (B, C, 1), mask.shape
        assert bool(jnp.all(jnp.isfinite(out)))
        max_err = float(jnp.max(jnp.abs(out - ref_out)))
        assert jnp.allclose(out, ref_out, rtol=1e-5, atol=1e-5), max_err
        assert jnp.allclose(mask[..., 0], ref_mask, rtol=1e-5, atol=1e-5)

    key = jax.random.PRNGKey(0)
    k0, k1, k2 = jax.random.split(key, 3)

    # Path A: single-pass (per-batch slab fits in VMEM), M multiple of 128.
    run_case(2, 64, 8, 16, 16, k0)
    # Path B (forced): two-phase streaming with M = 784 (NOT a multiple of 128)
    #                  -> masked pooling on the partial edge tile.
    run_case(2, 64, 4, 14, 14, k1, max_single_pass_bytes=0)
    # Path B with several lane tiles per batch (km > 1) and a partial edge tile.
    run_case(2, 64, 4, 14, 14, k2, max_single_pass_bytes=0, m_tile=256)

    print("KERNEL_OK")
</pallas_src>

<mosaic_0001>
module attributes {stable_mosaic.version = 11 : i64} {
  func.func @_sca_single_pass_kernel(%arg0: i32, %arg1: memref<1x64x2048xf32, #tpu.memory_space<vmem>>, %arg2: memref<8x64xf32, #tpu.memory_space<vmem>>, %arg3: memref<64x8xf32, #tpu.memory_space<vmem>>, %arg4: memref<1x64x2048xf32, #tpu.memory_space<vmem>>, %arg5: memref<1x64x1xf32, #tpu.memory_space<vmem>>) attributes {dimension_semantics = [#tpu.dimension_semantics<parallel>], iteration_bounds = array<i64: 2>, scalar_prefetch = 0 : i64, scratch_operands = 0 : i64, tpu.core_type = #tpu.core_type<tc>, window_params = [{transform_indices = @transform_0, window_bounds = array<i64: 1, 64, 2048>}, {pipeline_mode = #tpu.pipeline_mode<synchronous>, transform_indices = @transform_1, window_bounds = array<i64: 8, 64>}, {pipeline_mode = #tpu.pipeline_mode<synchronous>, transform_indices = @transform_2, window_bounds = array<i64: 64, 8>}, {transform_indices = @transform_3, window_bounds = array<i64: 1, 64, 2048>}, {transform_indices = @transform_4, window_bounds = array<i64: 1, 64, 1>}]} {
    %c0 = arith.constant 0 : index
    %c0_0 = arith.constant 0 : index
    %c0_1 = arith.constant 0 : index
    %0 = vector.load %arg1[%c0, %c0_0, %c0_1] : memref<1x64x2048xf32, #tpu.memory_space<vmem>>, vector<1x64x2048xf32>
    %1 = vector.shape_cast %0 : vector<1x64x2048xf32> to vector<64x2048xf32>
    %cst = arith.constant dense<0.000000e+00> : vector<64xf32>
    %2 = vector.multi_reduction <add>, %1, %cst [1] : vector<64x2048xf32> to vector<64xf32>
    %3 = vector.shape_cast %2 : vector<64xf32> to vector<64x1xf32>
    %cst_2 = arith.constant 4.8828125E-4 : f32
    %4 = vector.broadcast %cst_2 : f32 to vector<64x1xf32>
    %5 = arith.mulf %3, %4 : vector<64x1xf32>
    %c0_3 = arith.constant 0 : index
    %c0_4 = arith.constant 0 : index
    %6 = vector.load %arg2[%c0_3, %c0_4] : memref<8x64xf32, #tpu.memory_space<vmem>>, vector<8x64xf32>
    %cst_5 = arith.constant dense<0.000000e+00> : vector<8x1xf32>
    %7 = tpu.matmul %6, %5, %cst_5 {dimension_numbers = #tpu.dot_dimension_numbers<[1], [0], [0], [1], [0, 0, 1, 1], [], []>} : vector<8x64xf32>, vector<64x1xf32>, vector<8x1xf32> -> vector<8x1xf32>
    %cst_6 = arith.constant 0.000000e+00 : f32
    %8 = vector.broadcast %cst_6 : f32 to vector<8x1xf32>
    %9 = arith.maximumf %7, %8 : vector<8x1xf32>
    %c0_7 = arith.constant 0 : index
    %c0_8 = arith.constant 0 : index
    %10 = vector.load %arg3[%c0_7, %c0_8] : memref<64x8xf32, #tpu.memory_space<vmem>>, vector<64x8xf32>
    %cst_9 = arith.constant dense<0.000000e+00> : vector<64x1xf32>
    %11 = tpu.matmul %10, %9, %cst_9 {dimension_numbers = #tpu.dot_dimension_numbers<[1], [0], [0], [1], [0, 0, 1, 1], [], []>} : vector<64x8xf32>, vector<8x1xf32>, vector<64x1xf32> -> vector<64x1xf32>
    %12 = arith.negf %11 : vector<64x1xf32>
    %13 = math.exp %12 : vector<64x1xf32>
    %cst_10 = arith.constant 1.000000e+00 : f32
    %14 = vector.broadcast %cst_10 : f32 to vector<64x1xf32>
    %15 = arith.addf %14, %13 : vector<64x1xf32>
    %16 = arith.divf %14, %15 : vector<64x1xf32>
    %17 = arith.negf %16 : vector<64x1xf32>
    %18 = math.exp %17 : vector<64x1xf32>
    %cst_11 = arith.constant 1.000000e+00 : f32
    %19 = vector.broadcast %cst_11 : f32 to vector<64x1xf32>
    %20 = arith.addf %19, %18 : vector<64x1xf32>
    %21 = arith.divf %19, %20 : vector<64x1xf32>
    %c0_12 = arith.constant 0 : index
    %c0_13 = arith.constant 0 : index
    %c0_14 = arith.constant 0 : index
    %22 = vector.load %arg5[%c0_12, %c0_13, %c0_14] : memref<1x64x1xf32, #tpu.memory_space<vmem>>, vector<1x64x1xf32>
    %23 = vector.shape_cast %22 : vector<1x64x1xf32> to vector<64x1xf32>
    %24 = vector.shape_cast %21 : vector<64x1xf32> to vector<1x64x1xf32>
    tpu.vector_store %arg5[%c0_12, %c0_13, %c0_14], %24 {strides = array<i32>} : memref<1x64x1xf32, #tpu.memory_space<vmem>>, vector<1x64x1xf32>,
    %25 = vector.broadcast %21 : vector<64x1xf32> to vector<64x2048xf32>
    %26 = arith.mulf %1, %25 : vector<64x2048xf32>
    %c0_15 = arith.constant 0 : index
    %c0_16 = arith.constant 0 : index
    %c0_17 = arith.constant 0 : index
    %27 = vector.load %arg4[%c0_15, %c0_16, %c0_17] : memref<1x64x2048xf32, #tpu.memory_space<vmem>>, vector<1x64x2048xf32>
    %28 = vector.shape_cast %27 : vector<1x64x2048xf32> to vector<64x2048xf32>
    %29 = vector.shape_cast %26 : vector<64x2048xf32> to vector<1x64x2048xf32>
    tpu.vector_store %arg4[%c0_15, %c0_16, %c0_17], %29 {strides = array<i32>} : memref<1x64x2048xf32, #tpu.memory_space<vmem>>, vector<1x64x2048xf32>,
    return
  }
  func.func @transform_0(%arg0: i32) -> (i32, i32, i32) {
    %c0_i32 = arith.constant 0 : i32
    %c0_i32_0 = arith.constant 0 : i32
    %c0_i32_1 = arith.constant 0 : i32
    return %arg0, %c0_i32, %c0_i32_0 : i32, i32, i32
  }
  func.func @transform_1(%arg0: i32) -> (i32, i32) {
    %c0_i32 = arith.constant 0 : i32
    %c0_i32_0 = arith.constant 0 : i32
    %c0_i32_1 = arith.constant 0 : i32
    return %c0_i32, %c0_i32_0 : i32, i32
  }
  func.func @transform_2(%arg0: i32) -> (i32, i32) {
    %c0_i32 = arith.constant 0 : i32
    %c0_i32_0 = arith.constant 0 : i32
    %c0_i32_1 = arith.constant 0 : i32
    return %c0_i32, %c0_i32_0 : i32, i32
  }
  func.func @transform_3(%arg0: i32) -> (i32, i32, i32) {
    %c0_i32 = arith.constant 0 : i32
    %c0_i32_0 = arith.constant 0 : i32
    %c0_i32_1 = arith.constant 0 : i32
    return %arg0, %c0_i32, %c0_i32_0 : i32, i32, i32
  }
  func.func @transform_4(%arg0: i32) -> (i32, i32, i32) {
    %c0_i32 = arith.constant 0 : i32
    %c0_i32_0 = arith.constant 0 : i32
    %c0_i32_1 = arith.constant 0 : i32
    return %arg0, %c0_i32, %c0_i32_0 : i32, i32, i32
  }
}

</mosaic_0001>

<bundles_post_ra>
// kernel: spatial_crop_attention.1
= control target key start
LH: loop header
LB: loop body
LE: loop exit
PB: predicated region body
PF: predicated region fallthrough
CT: control target
= control target key end

     0   :  { %s1545_s15 = smov 0   ;;  %s2246_s0 = inlined_call_operand.vmem [shape: f32[2,64,2048], index: 0, kind: input, shape index: {}]   ;;  %s2247_s1 = inlined_call_operand.vmem [shape: f32[8,64], index: 1, kind: input, shape index: {}]   ;;  %s2248_s2 = inlined_call_operand.vmem [shape: f32[64,8], index: 2, kind: input, shape index: {}]   ;;  %s2249_s3 = inlined_call_operand.vmem [shape: f32[2,64,2048], index: 3, kind: output, shape index: {0}]   ;;  %s2250_s4 = inlined_call_operand.vmem [shape: f32[2,64,1], index: 4, kind: output, shape index: {1}]  }
   0x1 LB: > { %s1280_s16 = sadd.s32 4294967295, %s1517_s15   ;;  %p1284_p0 = scmp.ge.s32.totalorder %s1517_s15, 1  ;;  %s1517_s15 = sphi %s1545_s15, %s15_s15  }
   0x2   : > { %p165_p1 = scmp.lt.s32.totalorder %s1517_s15, 3 }
   0x4   : > { %p166_p2 = pnand %p1284_p0, %p165_p1 }
   0x5   : > { %p196_p3 = scmp.lt.s32.totalorder (!%p166_p2), %s1280_s16, 1 }
   0x6   : > { %169 = sbr.rel (%p166_p2) target bundleno = 732 (0x2dc), region = 32 }
   0xb   : > { %s2268_s16 = smov (!%p196_p3, %s1280_s16), 1  ;;  %vm484_vm0 = vcmask 523264   ;;  %vm517_vm1 = vcmask 64512  }
   0xc   : > { %s1318_s17 = sshll.u32 %s2268_s16, 10  ;;  %s1320_s13 = sshll.u32 %s2268_s16, 6 }
   0xd   : > { %s1561_s20 = scalar_lea.vmem %s2246_s0, %s1318_s17  ;;  %s1916_s19 = scalar_lea.vmem %s2250_s4, %s1320_s13 }
   0xe   : > { %v323_v0 = vld [vmem:[%s1561_s20 + $0x380] sm:$0xff]  ;;  %v324_v1 = vld [vmem:[%s1561_s20 + $0x388] sm:$0xff]  ;;  %v325_v2 = vld [vmem:[%s1561_s20 + $0x390] sm:$0xff]  ;;  %s1985_s23 = scalar_lea.vmem %s2249_s3, %s1318_s17 }
   0xf   : > { %v458_v3 = vadd.f32 %v324_v1, %v323_v0  ;;  %v326_v4 = vld [vmem:[%s1561_s20 + $0x398] sm:$0xff]  ;;  %v327_v6 = vld [vmem:[%s1561_s20 + $0x3a0] sm:$0xff]  ;;  %v292_v9 = vld [vmem:[%s1561_s20 + $0x288] sm:$0xff] }
  0x10   : > { %v291_v8 = vld [vmem:[%s1561_s20 + $0x280] sm:$0xff]  ;;  %v328_v10 = vld [vmem:[%s1561_s20 + $0x3a8] sm:$0xff]  ;;  %v293_v11 = vld [vmem:[%s1561_s20 + $0x290] sm:$0xff] }
  0x11   : > { %v459_v5 = vadd.f32 %v458_v3, %v325_v2  ;;  %v424_v12 = vadd.f32 %v292_v9, %v291_v8  ;;  %v294_v14 = vld [vmem:[%s1561_s20 + $0x298] sm:$0xff]  ;;  %v329_v15 = vld [vmem:[%s1561_s20 + $0x3b0] sm:$0xff]  ;;  %v295_v18 = vld [vmem:[%s1561_s20 + $0x2a0] sm:$0xff] }
  0x12   : > { %v330_v19 = vld [vmem:[%s1561_s20 + $0x3b8] sm:$0xff]  ;;  %v307_v21 = vld [vmem:[%s1561_s20 + $0x300] sm:$0xff]  ;;  %v296_v23 = vld [vmem:[%s1561_s20 + $0x2a8] sm:$0xff] }
  0x13   : > { %v460_v7 = vadd.f32 %v459_v5, %v326_v4  ;;  %v425_v16 = vadd.f32 %v424_v12, %v293_v11  ;;  %v308_v24 = vld [vmem:[%s1561_s20 + $0x308] sm:$0xff]  ;;  %v309_v25 = vld [vmem:[%s1561_s20 + $0x310] sm:$0xff]  ;;  %v331_v26 = vld [vmem:[%s1561_s20 + $0x3c0] sm:$0xff] }
  0x14   : > { %v441_v28 = vadd.f32 %v308_v24, %v307_v21  ;;  %v297_v30 = vld [vmem:[%s1561_s20 + $0x2b0] sm:$0xff]  ;;  %v310_v31 = vld [vmem:[%s1561_s20 + $0x318] sm:$0xff]  ;;  %v332_v32 = vld [vmem:[%s1561_s20 + $0x3c8] sm:$0xff] }
  0x15   : > { %v461_v13 = vadd.f32 %v460_v7, %v327_v6  ;;  %v426_v20 = vadd.f32 %v425_v16, %v294_v14  ;;  %v333_v35 = vld [vmem:[%s1561_s20 + $0x3d0] sm:$0xff]  ;;  %v298_v37 = vld [vmem:[%s1561_s20 + $0x2b8] sm:$0xff]  ;;  %v311_v38 = vld [vmem:[%s1561_s20 + $0x320] sm:$0xff] }
  0x16   : > { %v442_v34 = vadd.f32 %v441_v28, %v309_v25  ;;  %v259_v41 = vld [vmem:[%s1561_s20 + $0x180] sm:$0xff]  ;;  %v260_v42 = vld [vmem:[%s1561_s20 + $0x188] sm:$0xff]  ;;  %v261_v43 = vld [vmem:[%s1561_s20 + $0x190] sm:$0xff] }
  0x17   : > { %v462_v17 = vadd.f32 %v461_v13, %v328_v10  ;;  %v427_v27 = vadd.f32 %v426_v20, %v295_v18  ;;  %v299_v45 = vld [vmem:[%s1561_s20 + $0x2c0] sm:$0xff]  ;;  %v312_v46 = vld [vmem:[%s1561_s20 + $0x328] sm:$0xff]  ;;  %v390_v47 = vadd.f32 %v260_v42, %v259_v41  ;;  %v334_v48 = vld [vmem:[%s1561_s20 + $0x3d8] sm:$0xff] }
  0x18   : > { %v443_v40 = vadd.f32 %v442_v34, %v310_v31  ;;  %v262_v51 = vld [vmem:[%s1561_s20 + $0x198] sm:$0xff]  ;;  %v335_v52 = vld [vmem:[%s1561_s20 + $0x3e0] sm:$0xff]  ;;  %v300_v54 = vld [vmem:[%s1561_s20 + $0x2c8] sm:$0xff] }
  0x19   : > { %v463_v22 = vadd.f32 %v462_v17, %v329_v15  ;;  %v428_v33 = vadd.f32 %v427_v27, %v296_v23  ;;  %v313_v55 = vld [vmem:[%s1561_s20 + $0x330] sm:$0xff]  ;;  %v391_v56 = vadd.f32 %v390_v47, %v261_v43  ;;  %v336_v57 = vld [vmem:[%s1561_s20 + $0x3e8] sm:$0xff]  ;;  %v263_v61 = vld [vmem:[%s1561_s20 + $0x1a0] sm:$0xff] }
  0x1a   : > { %v444_v50 = vadd.f32 %v443_v40, %v311_v38  ;;  %v301_v58 = vld [vmem:[%s1561_s20 + $0x2d0] sm:$0xff]  ;;  %v314_v63 = vld [vmem:[%s1561_s20 + $0x338] sm:$0xff]  ;;  %v275_v1 = vld [vmem:[%s1561_s20 + $0x200] sm:$0xff] }
  0x1b   : > { %v464_v29 = vadd.f32 %v463_v22, %v330_v19  ;;  %v429_v39 = vadd.f32 %v428_v33, %v297_v30  ;;  %v392_v0 = vadd.f32 %v391_v56, %v262_v51  ;;  %v276_v2 = vld [vmem:[%s1561_s20 + $0x208] sm:$0xff]  ;;  %v337_v3 = vld [vmem:[%s1561_s20 + $0x3f0] sm:$0xff]  ;;  %v302_v10 = vld [vmem:[%s1561_s20 + $0x2d8] sm:$0xff] }
  0x1c   : > { %v445_v60 = vadd.f32 %v444_v50, %v312_v46  ;;  %v264_v6 = vld [vmem:[%s1561_s20 + $0x1a8] sm:$0xff]  ;;  %v277_v7 = vld [vmem:[%s1561_s20 + $0x210] sm:$0xff]  ;;  %v407_v8 = vadd.f32 %v276_v2, %v275_v1  ;;  %v315_v11 = vld [vmem:[%s1561_s20 + $0x340] sm:$0xff] }
  0x1d   : > { %v465_v36 = vadd.f32 %v464_v29, %v331_v26  ;;  %v430_v49 = vadd.f32 %v429_v39, %v298_v37  ;;  %v393_v12 = vadd.f32 %v392_v0, %v263_v61  ;;  %v278_v13 = vld [vmem:[%s1561_s20 + $0x218] sm:$0xff]  ;;  %v303_v15 = vld [vmem:[%s1561_s20 + $0x2e0] sm:$0xff]  ;;  %v265_v18 = vld [vmem:[%s1561_s20 + $0x1b0] sm:$0xff] }
  0x1e   : > { %v446_v5 = vadd.f32 %v445_v60, %v313_v55  ;;  %v338_v14 = vld [vmem:[%s1561_s20 + $0x3f8] sm:$0xff]  ;;  %v408_v19 = vadd.f32 %v407_v8, %v277_v7  ;;  %v304_v21 = vld [vmem:[%s1561_s20 + $0x2e8] sm:$0xff]  ;;  %v279_v24 = vld [vmem:[%s1561_s20 + $0x220] sm:$0xff] }
  0x1f   : > { %v466_v44 = vadd.f32 %v465_v36, %v332_v32  ;;  %v431_v59 = vadd.f32 %v430_v49, %v299_v45  ;;  %v316_v22 = vld [vmem:[%s1561_s20 + $0x348] sm:$0xff]  ;;  %v394_v23 = vadd.f32 %v393_v12, %v264_v6  ;;  %v317_v26 = vld [vmem:[%s1561_s20 + $0x350] sm:$0xff]  ;;  %v266_v28 = vld [vmem:[%s1561_s20 + $0x1b8] sm:$0xff] }
  0x20   : > { %v447_v17 = vadd.f32 %v446_v5, %v314_v63  ;;  %v409_v29 = vadd.f32 %v408_v19, %v278_v13  ;;  %v243_v30 = vld [vmem:[%s1561_s20 + $0x100] sm:$0xff]  ;;  %v280_v33 = vld [vmem:[%s1561_s20 + $0x228] sm:$0xff]  ;;  %v305_v36 = vld [vmem:[%s1561_s20 + $0x2f0] sm:$0xff] }
  0x21   : > { %v467_v53 = vadd.f32 %v466_v44, %v333_v35  ;;  %v432_v4 = vadd.f32 %v431_v59, %v300_v54  ;;  %v395_v32 = vadd.f32 %v394_v23, %v265_v18  ;;  %v244_v34 = vld [vmem:[%s1561_s20 + $0x108] sm:$0xff]  ;;  %v245_v35 = vld [vmem:[%s1561_s20 + $0x110] sm:$0xff]  ;;  %v267_v39 = vld [vmem:[%s1561_s20 + $0x1c0] sm:$0xff] }
  0x22   : > { %v448_v27 = vadd.f32 %v447_v17, %v315_v11  ;;  %v410_v40 = vadd.f32 %v409_v29, %v279_v24  ;;  %v373_v41 = vadd.f32 %v244_v34, %v243_v30  ;;  %v318_v43 = vld [vmem:[%s1561_s20 + $0x358] sm:$0xff]  ;;  %v281_v45 = vld [vmem:[%s1561_s20 + $0x230] sm:$0xff]  ;;  %v319_v49 = vld [vmem:[%s1561_s20 + $0x360] sm:$0xff] }
  0x23   : > { %v468_v62 = vadd.f32 %v467_v53, %v334_v48  ;;  %v433_v16 = vadd.f32 %v432_v4, %v301_v58  ;;  %v396_v44 = vadd.f32 %v395_v32, %v266_v28  ;;  %v246_v46 = vld [vmem:[%s1561_s20 + $0x118] sm:$0xff]  ;;  %v268_v51 = vld [vmem:[%s1561_s20 + $0x1c8] sm:$0xff]  ;;  %v269_v54 = vld [vmem:[%s1561_s20 + $0x1d0] sm:$0xff] }
  0x24   : > { %v449_v38 = vadd.f32 %v448_v27, %v316_v22  ;;  %v306_v47 = vld [vmem:[%s1561_s20 + $0x2f8] sm:$0xff]  ;;  %v374_v53 = vadd.f32 %v373_v41, %v245_v35  ;;  %v228_v63 = vld [vmem:[%s1561_s20 + $0x88] sm:$0xff]  ;;  %v229_v0 = vld [vmem:[%s1561_s20 + $0x90] sm:$0xff] }
  0x25   : > { %v469_v9 = vadd.f32 %v468_v62, %v335_v52  ;;  %v434_v25 = vadd.f32 %v433_v16, %v302_v10  ;;  %v411_v52 = vadd.f32 %v410_v40, %v280_v33  ;;  %v397_v55 = vadd.f32 %v396_v44, %v267_v39  ;;  %v282_v56 = vld [vmem:[%s1561_s20 + $0x238] sm:$0xff]  ;;  %v227_v62 = vld [vmem:[%s1561_s20 + $0x80] sm:$0xff]  ;;  %v320_v1 = vld [vmem:[%s1561_s20 + $0x368] sm:$0xff] }
  0x26   : > { %v450_v50 = vadd.f32 %v449_v38, %v317_v26  ;;  %v375_v61 = vadd.f32 %v374_v53, %v246_v46  ;;  %v248_v4 = vld [vmem:[%s1561_s20 + $0x128] sm:$0xff]  ;;  %v356_v5 = vadd.f32 %v228_v63, %v227_v62  ;;  %v321_v7 = vld [vmem:[%s1561_s20 + $0x370] sm:$0xff]  ;;  %v230_v12 = vld [vmem:[%s1561_s20 + $0x98] sm:$0xff] }
  0x27   : > { %v470_v20 = vadd.f32 %v469_v9, %v336_v57  ;;  %v435_v37 = vadd.f32 %v434_v25, %v303_v15  ;;  %v247_v57 = vld [vmem:[%s1561_s20 + $0x120] sm:$0xff]  ;;  %v412_v60 = vadd.f32 %v411_v52, %v281_v45  ;;  %v398_v2 = vadd.f32 %v397_v55, %v268_v51  ;;  %v270_v9 = vld [vmem:[%s1561_s20 + $0x1d8] sm:$0xff]  ;;  %v284_v15 = vld [vmem:[%s1561_s20 + $0x248] sm:$0xff] }
  0x28   : > { %v451_v59 = vadd.f32 %v450_v50, %v318_v43  ;;  %v376_v11 = vadd.f32 %v375_v61, %v247_v57  ;;  %v322_v13 = vld [vmem:[%s1561_s20 + $0x378] sm:$0xff]  ;;  %v249_v16 = vld [vmem:[%s1561_s20 + $0x130] sm:$0xff]  ;;  %v357_v17 = vadd.f32 %v356_v5, %v229_v0  ;;  %v271_v19 = vld [vmem:[%s1561_s20 + $0x1e0] sm:$0xff] }
  0x29   : > { %v471_v31 = vadd.f32 %v470_v20, %v337_v3  ;;  %v436_v48 = vadd.f32 %v435_v37, %v304_v21  ;;  %v283_v3 = vld [vmem:[%s1561_s20 + $0x240] sm:$0xff]  ;;  %v413_v10 = vadd.f32 %v412_v60, %v282_v56  ;;  %v285_v20 = vld [vmem:[%s1561_s20 + $0x250] sm:$0xff]  ;;  %v250_v25 = vld [vmem:[%s1561_s20 + $0x138] sm:$0xff] }
  0x2a   : > { %v452_v8 = vadd.f32 %v451_v59, %v319_v49  ;;  %v377_v22 = vadd.f32 %v376_v11, %v248_v4  ;;  %v231_v23 = vld [vmem:[%s1561_s20 + $0xa0] sm:$0xff]  ;;  %v358_v26 = vadd.f32 %v357_v17, %v230_v12  ;;  %v1652_v28 = vld [vmem:[%s1561_s20 + $0x8] sm:$0xff]  ;;  %v1657_v34 = vld [vmem:[%s1561_s20 + $0x10] sm:$0xff] }
  0x2b   : > { %v472_v42 = vadd.f32 %v471_v31, %v338_v14  ;;  %v437_v58 = vadd.f32 %v436_v48, %v305_v36  ;;  %v399_v14 = vadd.f32 %v398_v2, %v269_v54  ;;  %v414_v21 = vadd.f32 %v413_v10, %v283_v3  ;;  %v1649_v27 = vld [vmem:[%s1561_s20] sm:$0xff]  ;;  %v272_v30 = vld [vmem:[%s1561_s20 + $0x1e8] sm:$0xff]  ;;  %v286_v37 = vld [vmem:[%s1561_s20 + $0x258] sm:$0xff] }
  0x2c   : > { %v453_v18 = vadd.f32 %v452_v8, %v320_v1  ;;  %v378_v32 = vadd.f32 %v377_v22, %v249_v16  ;;  %v232_v33 = vld [vmem:[%s1561_s20 + $0xa8] sm:$0xff]  ;;  %v339_v35 = vadd.f32 %v1652_v28, %v1649_v27  ;;  %v251_v38 = vld [vmem:[%s1561_s20 + $0x140] sm:$0xff]  ;;  %v359_v39 = vadd.f32 %v358_v26, %v231_v23  ;;  %v1664_v40 = vld [vmem:[%s1561_s20 + $0x18] sm:$0xff] }
  0x2d   : > { %473 = vadd.xlane.f32.xlu0 %v472_v42  ;;  %v438_v6 = vadd.f32 %v437_v58, %v306_v47  ;;  %v400_v24 = vadd.f32 %v399_v14, %v270_v9  ;;  %v415_v31 = vadd.f32 %v414_v21, %v284_v15  ;;  %v273_v42 = vld [vmem:[%s1561_s20 + $0x1f0] sm:$0xff]  ;;  %v287_v48 = vld [vmem:[%s1561_s20 + $0x260] sm:$0xff]  ;;  %v252_v49 = vld [vmem:[%s1561_s20 + $0x148] sm:$0xff] }
  0x2e   : > { %v454_v29 = vadd.f32 %v453_v18, %v321_v7  ;;  %v379_v44 = vadd.f32 %v378_v32, %v250_v25  ;;  %v233_v45 = vld [vmem:[%s1561_s20 + $0xb0] sm:$0xff]  ;;  %v340_v46 = vadd.f32 %v339_v35, %v1657_v34  ;;  %v360_v50 = vadd.f32 %v359_v39, %v232_v33  ;;  %v1672_v51 = vld [vmem:[%s1561_s20 + $0x20] sm:$0xff]  ;;  %v274_v52 = vld [vmem:[%s1561_s20 + $0x1f8] sm:$0xff] }
  0x2f   : > { %439 = vadd.xlane.f32.xlu1 %v438_v6  ;;  %v401_v36 = vadd.f32 %v400_v24, %v271_v19  ;;  %v416_v43 = vadd.f32 %v415_v31, %v285_v20  ;;  %v234_v55 = vld [vmem:[%s1561_s20 + $0xb8] sm:$0xff]  ;;  %v288_v58 = vld [vmem:[%s1561_s20 + $0x268] sm:$0xff]  ;;  %v253_v59 = vld [vmem:[%s1561_s20 + $0x150] sm:$0xff] }
  0x30   : > { %v455_v41 = vadd.f32 %v454_v29, %v322_v13  ;;  %v380_v54 = vadd.f32 %v379_v44, %v251_v38  ;;  %v341_v56 = vadd.f32 %v340_v46, %v1664_v40  ;;  %v361_v60 = vadd.f32 %v360_v50, %v233_v45  ;;  %v1680_v61 = vld [vmem:[%s1561_s20 + $0x28] sm:$0xff]  ;;  %v235_v0 = vld [vmem:[%s1561_s20 + $0xc0] sm:$0xff]  ;;  %v289_v3 = vld [vmem:[%s1561_s20 + $0x270] sm:$0xff] }
  0x31   : > { %v402_v47 = vadd.f32 %v401_v36, %v272_v30  ;;  %v417_v53 = vadd.f32 %v416_v43, %v286_v37  ;;  %v254_v4 = vld [vmem:[%s1561_s20 + $0x158] sm:$0xff]  ;;  %v1687_v6 = vld [vmem:[%s1561_s20 + $0x30] sm:$0xff]  ;;  %v236_v9 = vld [vmem:[%s1561_s20 + $0xc8] sm:$0xff] }
  0x32   : > { %v381_v63 = vadd.f32 %v380_v54, %v252_v49  ;;  %v342_v1 = vadd.f32 %v341_v56, %v1672_v51  ;;  %v362_v5 = vadd.f32 %v361_v60, %v234_v55  ;;  %v290_v11 = vld [vmem:[%s1561_s20 + $0x278] sm:$0xff]  ;;  %v255_v12 = vld [vmem:[%s1561_s20 + $0x160] sm:$0xff]  ;;  %v237_v17 = vld [vmem:[%s1561_s20 + $0xd0] sm:$0xff] }
  0x33   : > { %v403_v57 = vadd.f32 %v402_v47, %v273_v42  ;;  %v418_v62 = vadd.f32 %v417_v53, %v287_v48  ;;  %v1694_v14 = vld [vmem:[%s1561_s20 + $0x38] sm:$0xff]  ;;  %v256_v19 = vld [vmem:[%s1561_s20 + $0x168] sm:$0xff]  ;;  %v1700_v21 = vld [vmem:[%s1561_s20 + $0x40] sm:$0xff] }
  0x34   : > { %v382_v8 = vadd.f32 %v381_v63, %v253_v59  ;;  %v343_v10 = vadd.f32 %v342_v1, %v1680_v61  ;;  %v363_v13 = vadd.f32 %v362_v5, %v235_v0  ;;  %v238_v24 = vld [vmem:[%s1561_s20 + $0xd8] sm:$0xff]  ;;  %v257_v26 = vld [vmem:[%s1561_s20 + $0x170] sm:$0xff]  ;;  %v1706_v30 = vld [vmem:[%s1561_s20 + $0x48] sm:$0xff] }
  0x35   : > { %456 = vadd.xlane.f32.xlu0 %v455_v41  ;;  %v404_v2 = vadd.f32 %v403_v57, %v274_v52  ;;  %v419_v7 = vadd.f32 %v418_v62, %v288_v58  ;;  %v239_v32 = vld [vmem:[%s1561_s20 + $0xe0] sm:$0xff]  ;;  %v258_v35 = vld [vmem:[%s1561_s20 + $0x178] sm:$0xff]  ;;  %v1712_v37 = vld [vmem:[%s1561_s20 + $0x50] sm:$0xff] }
  0x36   : > { %v383_v16 = vadd.f32 %v382_v8, %v254_v4  ;;  %v344_v18 = vadd.f32 %v343_v10, %v1687_v6  ;;  %v364_v20 = vadd.f32 %v363_v13, %v236_v9  ;;  %v240_v39 = vld [vmem:[%s1561_s20 + $0xe8] sm:$0xff]  ;;  %v1717_v43 = vld [vmem:[%s1561_s20 + $0x58] sm:$0xff]  ;;  %v241_v45 = vld [vmem:[%s1561_s20 + $0xf0] sm:$0xff] }
  0x37   : > { %405 = vadd.xlane.f32.xlu2 %v404_v2  ;;  %v420_v15 = vadd.f32 %v419_v7, %v289_v3  ;;  %v1722_v48 = vld [vmem:[%s1561_s20 + $0x60] sm:$0xff]  ;;  %v242_v49 = vld [vmem:[%s1561_s20 + $0xf8] sm:$0xff]  ;;  %v1727_v53 = vld [vmem:[%s1561_s20 + $0x68] sm:$0xff] }
  0x38   : > { %v384_v23 = vadd.f32 %v383_v16, %v255_v12  ;;  %v345_v25 = vadd.f32 %v344_v18, %v1694_v14  ;;  %v365_v29 = vadd.f32 %v364_v20, %v237_v17  ;;  %v1731_v56 = vld [vmem:[%s1561_s20 + $0x70] sm:$0xff]  ;;  %v1735_v58 = vld [vmem:[%s1561_s20 + $0x78] sm:$0xff]  ;;  %v483_v16 = vld [vmem:[%s2247_s1] sm:$0xff] }
  0x39   : > { %v421_v22 = vadd.f32 %v420_v15, %v290_v11  ;;  %v512_v20 = vld [vmem:[%s2248_s2 + $0x18] sm:$0xff] }
  0x3a   : > { %v385_v31 = vadd.f32 %v384_v23, %v256_v19  ;;  %v346_v33 = vadd.f32 %v345_v25, %v1700_v21  ;;  %v366_v36 = vadd.f32 %v365_v29, %v238_v24  ;;  %v509_v19 = vld [vmem:[%s2248_s2] sm:$0xff]  ;;  %v510_v23 = vld [vmem:[%s2248_s2 + $0x8] sm:$0xff]  ;;  %v516_v25 = vld [vmem:[%s2248_s2 + $0x38] sm:$0xff] }
  0x3b   : > { %422 = vadd.xlane.f32.xlu1 %v421_v22  ;;  %v515_v22 = vld [vmem:[%s2248_s2 + $0x30] sm:$0xff]  ;;  %v513_v24 = vld [vmem:[%s2248_s2 + $0x20] sm:$0xff]  ;;  %v514_v29 = vld [vmem:[%s2248_s2 + $0x28] sm:$0xff] }
  0x3c   : > { %v386_v38 = vadd.f32 %v385_v31, %v257_v26  ;;  %v347_v41 = vadd.f32 %v346_v33, %v1706_v30  ;;  %v367_v42 = vadd.f32 %v366_v36, %v239_v32  ;;  %v511_v26 = vld [vmem:[%s2248_s2 + $0x10] sm:$0xff] }
  0x3e   : > { %v387_v44 = vadd.f32 %v386_v38, %v258_v35  ;;  %v348_v46 = vadd.f32 %v347_v41, %v1712_v37  ;;  %v368_v47 = vadd.f32 %v367_v42, %v240_v39 }
  0x40   : > { %388 = vadd.xlane.f32.xlu2 %v387_v44  ;;  %v349_v50 = vadd.f32 %v348_v46, %v1717_v43  ;;  %v369_v52 = vadd.f32 %v368_v47, %v241_v45 }
  0x42   : > { %v350_v54 = vadd.f32 %v349_v50, %v1722_v48  ;;  %v370_v55 = vadd.f32 %v369_v52, %v242_v49 }
  0x44   : > { %v351_v57 = vadd.f32 %v350_v54, %v1727_v53  ;;  %371 = vadd.xlane.f32.xlu0 %v370_v55 }
  0x46   : > { %v352_v59 = vadd.f32 %v351_v57, %v1731_v56 }
  0x48   : > { %v353_v60 = vadd.f32 %v352_v59, %v1735_v58 }
  0x4a   : > { %354 = vadd.xlane.f32.xlu1 %v353_v60 }
  0xa0   : > { %v474_v62 = vpop.xlane.xlu0 %473 }
  0xa1   : > { %v482_v63 = vmul.f32 0.00048828125, %v474_v62 }
  0xa2   : > { %v440_v0 = vpop.xlane.xlu1 %439 }
  0xa3   : > { %496 = vmatpush.msra.mxu0 %v482_v63  ;;  %v480_v3 = vmul.f32 0.00048828125, %v440_v0 }
  0xa8   : > { %v457_v1 = vpop.xlane.xlu0 %456 }
  0xa9   : > { %v481_v2 = vmul.f32 0.00048828125, %v457_v1 }
  0xaa   : > { %v406_v4 = vpop.xlane.xlu2 %405 }
  0xab   : > { %497 = vmatpush.msra.mxu0 %v481_v2  ;;  %v478_v8 = vmul.f32 0.00048828125, %v406_v4 }
  0xad   : > { %498 = vmatpush.msra.mxu0 %v480_v3 }
  0xae   : > { %v423_v5 = vpop.xlane.xlu1 %422 }
  0xaf   : > { %v479_v7 = vmul.f32 0.00048828125, %v423_v5 }
  0xb1   : > { %499 = vmatpush.msra.mxu0 %v479_v7 }
  0xb3   : > { %500 = vmatpush.msra.mxu0 %v478_v8  ;;  %v389_v9 = vpop.xlane.xlu2 %388 }
  0xb4   : > { %v477_v10 = vmul.f32 0.00048828125, %v389_v9 }
  0xb6   : > { %501 = vmatpush.msra.mxu0 %v477_v10 }
  0xb7   : > { %v372_v11 = vpop.xlane.xlu0 %371 }
  0xb8   : > { %v476_v12 = vmul.f32 0.00048828125, %v372_v11 }
  0xba   : > { %502 = vmatpush.msra.mxu0 %v476_v12 }
  0xbd   : > { %v355_v13 = vpop.xlane.xlu1 %354 }
  0xbe   : > { %v475_v15 = vmul.f32 0.00048828125, %v355_v13 }
  0xc0   : > { %503 = vmatpush.msra.mxu0 %v475_v15 }
  0xc1   : > { %1291 = vmatmul.msk.f32.vlgmr.msra.gmra.mxu0 %vm484_vm0, %v483_v16 }
 0x13e   : > { %v505_v17 = vpop.f32.mrf.mxu0 }
 0x13f   : > { %v508_v18 = vmax.f32 %v505_v17, 0.0 }
 0x141   : > { %557 = vmatpush.msra.mxu1 %v508_v18  ;;  %1321 = vmatpush.msra.mxu2 %v508_v18 }
 0x142   : > { %1322 = vmatpush.msra.mxu3 %v508_v18  ;;  %1292 = vmatmul.msk.f32.vlgmr.msra.gmra.mxu1 %vm517_vm1, %v509_v19 }
 0x143   : > { %1295 = vmatmul.msk.f32.vlgmr.msra.gmra.mxu2 %vm517_vm1, %v512_v20  ;;  %1298 = vmatmul.msk.f32.vlgmr.msra.gmra.mxu3 %vm517_vm1, %v515_v22 }
 0x14a   : > { %1293 = vmatmul.msk.f32.gmra.mxu1 %vm517_vm1, %v510_v23 }
 0x14b   : > { %1296 = vmatmul.msk.f32.gmra.mxu2 %vm517_vm1, %v513_v24  ;;  %1299 = vmatmul.msk.f32.gmra.mxu3 %vm517_vm1, %v516_v25 }
 0x152   : > { %1294 = vmatmul.msk.f32.gmra.mxu1 %vm517_vm1, %v511_v26 }
 0x153   : > { %1297 = vmatmul.msk.f32.gmra.mxu2 %vm517_vm1, %v514_v29 }
 0x1bf   : > { %v559_v31 = vpop.f32.mrf.mxu1 }
 0x1c0   : > { %v1300_v32 = vmul.f32 -1.442695, %v559_v31 }
 0x1c2   : > { %1335 = vpow2.f32 %v1300_v32 }
 0x1c6   : > { %v568_v33 = vpop.f32.mrf.mxu2  ;;  %v577_v35 = vpop.f32.mrf.mxu3 }
 0x1c7   : > { %v1303_v36 = vmul.f32 -1.442695, %v568_v33  ;;  %v1306_v38 = vmul.f32 -1.442695, %v577_v35  ;;  %v562_v39 = vpop.f32.mrf.mxu1 }
 0x1c8   : > { %v1336_v41 = vpop.eup %1335  ;;  %v1301_v42 = vmul.f32 -1.442695, %v562_v39 }
 0x1c9   : > { %v607_v44 = vadd.f32 1.0, %v1336_v41  ;;  %1337 = vpow2.f32 %v1303_v36 }
 0x1ca   : > { %1339 = vpow2.f32 %v1306_v38 }
 0x1cb   : > { %1341 = vrcp.f32 %v607_v44  ;;  %v624_v63 = vand.u32 2147483647, %v607_v44  ;;  %v626_v2 = vand.u32 2147483648, %v607_v44  ;;  %vm620_vm2 = vweird.f32 %v607_v44 }
 0x1cc   : > { %1343 = vpow2.f32 %v1301_v42 }
 0x1cd   : > { %vm1782_vm3 = vcmp.eq.f32.partialorder %v624_v63, 8.507059e+37  ;;  %v627_v13 = vor.u32 1.1754944e-38, %v626_v2 }
 0x1ce   : > { %v571_v45 = vpop.f32.mrf.mxu2  ;;  %v580_v46 = vpop.f32.mrf.mxu3 }
 0x1cf   : > { %v1338_v47 = vpop.eup %1337  ;;  %v1304_v49 = vmul.f32 -1.442695, %v571_v45  ;;  %v565_v54 = vpop.f32.mrf.mxu1  ;;  %v1307_v59 = vmul.f32 -1.442695, %v580_v46 }
 0x1d0   : > { %v1340_v50 = vpop.eup %1339  ;;  %v1774_v52 = vadd.f32 1.0, %v1338_v47  ;;  %v1302_v0 = vmul.f32 -1.442695, %v565_v54 }
 0x1d1   : > { %v1342_v55 = vpop.eup %1341  ;;  %v1776_v57 = vadd.f32 1.0, %v1340_v50  ;;  %1345 = vpow2.f32 %v1304_v49 }
 0x1d2   : > { %v1344_v60 = vpop.eup %1343  ;;  %v616_v62 = vmul.f32 %v1342_v55, %v607_v44  ;;  %1347 = vrcp.f32 %v1774_v52  ;;  %v669_v8 = vand.u32 2147483647, %v1774_v52  ;;  %v671_v9 = vand.u32 2147483648, %v1774_v52 }
 0x1d3   : > { %1349 = vrcp.f32 %v1776_v57  ;;  %v1780_v3 = vadd.f32 1.0, %v1344_v60  ;;  %v716_v10 = vand.u32 2147483648, %v1776_v57  ;;  %vm621_vm4 = vweird.f32 %v1342_v55 }
 0x1d4   : > { %v617_v1 = vsub.f32 1.0, %v616_v62  ;;  %1351 = vpow2.f32 %v1307_v59  ;;  %vm665_vm5 = vweird.f32 %v1774_v52  ;;  %vm710_vm6 = vweird.f32 %v1776_v57  ;;  %vm1804_vm7 = vmor %vm620_vm2, %vm621_vm4 }
 0x1d5   : > { %1353 = vrcp.f32 %v1780_v3  ;;  %v714_v18 = vand.u32 2147483647, %v1776_v57  ;;  %v639_v22 = vand.u32 2147483647, %v1780_v3  ;;  %v641_v23 = vand.u32 2147483648, %v1780_v3 }
 0x1d6   : > { %v618_v4 = vmul.f32 %v1342_v55, %v617_v1  ;;  %1355 = vpow2.f32 %v1302_v0  ;;  %v574_v19 = vpop.f32.mrf.mxu2  ;;  %vm1808_vm8 = vcmp.eq.f32.partialorder %v669_v8, 8.507059e+37  ;;  %v672_v31 = vor.u32 1.1754944e-38, %v671_v9 }
 0x1d7   : > { %v1346_v7 = vpop.eup %1345  ;;  %v1812_v32 = vor.u32 1.1754944e-38, %v716_v10  ;;  %v1305_v39 = vmul.f32 -1.442695, %v574_v19  ;;  %vm635_vm10 = vweird.f32 %v1780_v3  ;;  %vm1821_vm11 = vcmp.eq.f32.partialorder %v714_v18, 8.507059e+37 }
 0x1d8   : > { %v1348_v11 = vpop.eup %1347  ;;  %v619_v12 = vadd.f32 %v1342_v55, %v618_v4  ;;  %v1790_v15 = vadd.f32 1.0, %v1346_v7  ;;  %vm1825_vm12 = vcmp.eq.f32.partialorder %v639_v22, 8.507059e+37  ;;  %v642_v49 = vor.u32 1.1754944e-38, %v641_v23 }
 0x1d9   : > { %v1792_v16 = vpop.eup %1349  ;;  %v661_v17 = vmul.f32 %v1348_v11, %v1774_v52  ;;  %vm666_vm9 = vweird.f32 %v1348_v11  ;;  %v1519_v1 = vmov 0  }
 0x1da   : > { %v706_v20 = vmul.f32 %v1792_v16, %v1776_v57  ;;  %1357 = vrcp.f32 %v1790_v15  ;;  %v1352_v24 = vpop.eup %1351  ;;  %v623_v35 = vsel %vm1804_vm7, %v1342_v55, %v619_v12  ;;  %vm711_vm13 = vweird.f32 %v1792_v16  ;;  %vm667_vm14 = vmor %vm665_vm5, %vm666_vm9  ;;  %1332 = vset.pattern.permute.xlu2 %v1519_v1  ;;  %1333 = vset.pattern.permute.xlu0 %v1519_v1 }
 0x1db   : > { %v662_v26 = vsub.f32 1.0, %v661_v17  ;;  %v1354_v33 = vpop.eup %1353  ;;  %v1816_v38 = vadd.f32 1.0, %v1352_v24  ;;  %v628_v50 = vsel %vm1782_vm3, %v627_v13, %v623_v35  ;;  %vm680_vm15 = vweird.f32 %v1790_v15  ;;  %1334 = vset.pattern.permute.xlu1 %v1519_v1  ;;  %vm1847_vm1 = vmor %vm710_vm6, %vm711_vm13 }
 0x1dc   : > { %v707_v36 = vsub.f32 1.0, %v706_v20  ;;  %v1356_v41 = vpop.eup %1355  ;;  %v631_v44 = vmul.f32 %v1354_v33, %v1780_v3  ;;  %vm636_vm0 = vweird.f32 %v1354_v33  ;;  %v1308_v2 = vmul.f32 -1.442695, %v628_v50 }
 0x1dd   : > { %v663_v42 = vmul.f32 %v1348_v11, %v662_v26  ;;  %1359 = vrcp.f32 %v1816_v38  ;;  %v1836_v60 = vadd.f32 1.0, %v1356_v41  ;;  %v684_v5 = vand.u32 2147483647, %v1790_v15  ;;  %vm637_vm3 = vmor %vm635_vm10, %vm636_vm0 }
 0x1de   : > { %v708_v45 = vmul.f32 %v1792_v16, %v707_v36  ;;  %v632_v55 = vsub.f32 1.0, %v631_v44  ;;  %1361 = vpow2.f32 %v1305_v39  ;;  %v686_v10 = vand.u32 2147483648, %v1790_v15 }
 0x1df   : > { %v664_v54 = vadd.f32 %v1348_v11, %v663_v42  ;;  %vm725_vm2 = vweird.f32 %v1816_v38  ;;  %v729_v13 = vand.u32 2147483647, %v1816_v38  ;;  %v731_v57 = vand.u32 2147483648, %v1816_v38 }
 0x1e0   : > { %v1358_v59 = vpop.eup %1357  ;;  %v633_v63 = vmul.f32 %v1354_v33, %v632_v55  ;;  %v709_v52 = vadd.f32 %v1792_v16, %v708_v45  ;;  %1363 = vrcp.f32 %v1836_v60  ;;  %vm685_vm7 = vcmp.eq.f32.partialorder %v684_v5, 8.507059e+37 }
 0x1e1   : > { %v668_v62 = vsel %vm667_vm14, %v1348_v11, %v664_v54  ;;  %v676_v0 = vmul.f32 %v1358_v59, %v1790_v15  ;;  %vm681_vm4 = vweird.f32 %v1358_v59  ;;  %1365 = vpow2.f32 %v1308_v2 }
 0x1e2   : > { %v673_v4 = vsel %vm1808_vm8, %v672_v31, %v668_v62  ;;  %v634_v8 = vadd.f32 %v1354_v33, %v633_v63  ;;  %v713_v22 = vsel %vm1847_vm1, %v1792_v16, %v709_v52  ;;  %vm682_vm6 = vmor %vm680_vm15, %vm681_vm4  ;;  %v687_v29 = vor.u32 1.1754944e-38, %v686_v10 }
 0x1e3   : > { %v677_v9 = vsub.f32 1.0, %v676_v0  ;;  %v1360_v11 = vpop.eup %1359  ;;  %v1311_v12 = vmul.f32 -1.442695, %v673_v4  ;;  %v718_v16 = vsel %vm1821_vm11, %v1812_v32, %v713_v22  ;;  %v732_v39 = vor.u32 1.1754944e-38, %v731_v57 }
 0x1e4   : > { %v638_v17 = vsel %vm637_vm3, %v1354_v33, %v634_v8  ;;  %v721_v19 = vmul.f32 %v1360_v11, %v1816_v38  ;;  %v1362_v20 = vpop.eup %1361  ;;  %vm726_vm5 = vweird.f32 %v1360_v11  ;;  %vm730_vm9 = vcmp.eq.f32.partialorder %v729_v13, 8.507059e+37 }
 0x1e5   : > { %v678_v18 = vmul.f32 %v1358_v59, %v677_v9  ;;  %v643_v3 = vsel %vm1825_vm12, %v642_v49, %v638_v17  ;;  %v1865_v26 = vadd.f32 1.0, %v1362_v20  ;;  %1367 = vpow2.f32 %v1311_v12  ;;  %vm727_vm8 = vmor %vm725_vm2, %vm726_vm5 }
 0x1e6   : > { %v1309_v23 = vmul.f32 -1.442695, %v643_v3  ;;  %v722_v25 = vsub.f32 1.0, %v721_v19  ;;  %v1364_v35 = vpop.eup %1363  ;;  %v1314_v45 = vmul.f32 -1.442695, %v718_v16  ;;  %v656_v38 = vand.u32 2147483648, %v1836_v60 }
 0x1e7   : > { %v679_v24 = vadd.f32 %v1358_v59, %v678_v18  ;;  %1369 = vrcp.f32 %v1865_v26  ;;  %v646_v42 = vmul.f32 %v1364_v35, %v1836_v60  ;;  %v1366_v44 = vpop.eup %1365  ;;  %v654_v54 = vand.u32 2147483647, %v1836_v60 }
 0x1e8   : > { %v723_v33 = vmul.f32 %v1360_v11, %v722_v25  ;;  %1371 = vpow2.f32 %v1309_v23  ;;  %v1877_v47 = vadd.f32 1.0, %v1366_v44  ;;  %vm651_vm10 = vweird.f32 %v1364_v35 }
 0x1e9   : > { %v683_v31 = vsel %vm682_vm6, %v1358_v59, %v679_v24  ;;  %v647_v46 = vsub.f32 1.0, %v646_v42  ;;  %vm650_vm11 = vweird.f32 %v1836_v60  ;;  %vm655_vm13 = vcmp.eq.f32.partialorder %v654_v54, 8.507059e+37 }
 0x1ea   : > { %v688_v36 = vsel %vm685_vm7, %v687_v29, %v683_v31  ;;  %v724_v41 = vadd.f32 %v1360_v11, %v723_v33  ;;  %vm652_vm12 = vmor %vm650_vm11, %vm651_vm10  ;;  %v657_v52 = vor.u32 1.1754944e-38, %v656_v38  ;;  %v699_v8 = vand.u32 2147483647, %v1865_v26 }
 0x1eb   : > { %v1312_v15 = vmul.f32 -1.442695, %v688_v36  ;;  %v1368_v49 = vpop.eup %1367  ;;  %v648_v62 = vmul.f32 %v1364_v35, %v647_v46  ;;  %v701_v9 = vand.u32 2147483648, %v1865_v26  ;;  %v776_v57 = vand.u32 2147483647, %v1877_v47 }
 0x1ec   : > { %v728_v32 = vsel %vm727_vm8, %v1360_v11, %v724_v41  ;;  %v1884_v2 = vadd.f32 1.0, %v1368_v49  ;;  %vm695_vm15 = vweird.f32 %v1865_v26  ;;  %vm887_vm0 = vcmask 7168  }
 0x1ed   : > { %v733_v50 = vsel %vm730_vm9, %v732_v39, %v728_v32  ;;  %1373 = vpow2.f32 %v1312_v15  ;;  %v1370_v55 = vpop.eup %1369  ;;  %v649_v1 = vadd.f32 %v1364_v35, %v648_v62  ;;  %v702_v20 = vor.u32 1.1754944e-38, %v701_v9 }
 0x1ee   : > { %v1315_v59 = vmul.f32 -1.442695, %v733_v50  ;;  %1375 = vrcp.f32 %v1877_v47  ;;  %v1372_v63 = vpop.eup %1371  ;;  %v691_v0 = vmul.f32 %v1370_v55, %v1865_v26  ;;  %vm696_vm14 = vweird.f32 %v1370_v55 }
 0x1ef   : > { %1377 = vpow2.f32 %v1314_v45  ;;  %v1886_v4 = vadd.f32 1.0, %v1372_v63  ;;  %v653_v7 = vsel %vm652_vm12, %v1364_v35, %v649_v1  ;;  %vm697_vm1 = vmor %vm695_vm15, %vm696_vm14  ;;  %v778_v22 = vand.u32 2147483648, %v1877_v47 }
 0x1f0   : > { %1379 = vpow2.f32 %v1315_v59  ;;  %v692_v5 = vsub.f32 1.0, %v691_v0  ;;  %v658_v11 = vsel %vm655_vm13, %v657_v52, %v653_v7  ;;  %vm700_vm2 = vcmp.eq.f32.partialorder %v699_v8, 8.507059e+37 }
 0x1f1   : > { %1381 = vrcp.f32 %v1884_v2  ;;  %v1310_v13 = vmul.f32 -1.442695, %v658_v11  ;;  %vm772_vm3 = vweird.f32 %v1877_v47  ;;  %vm1899_vm4 = vcmp.eq.f32.partialorder %v776_v57, 8.507059e+37 }
 0x1f2   : > { %v693_v12 = vmul.f32 %v1370_v55, %v692_v5  ;;  %1383 = vrcp.f32 %v1886_v4  ;;  %v779_v15 = vor.u32 1.1754944e-38, %v778_v22  ;;  %v821_v41 = vand.u32 2147483647, %v1884_v2 }
 0x1f3   : > { %v1374_v10 = vpop.eup %1373  ;;  %1385 = vpow2.f32 %v1310_v13  ;;  %v823_v46 = vand.u32 2147483648, %v1884_v2  ;;  %v791_v54 = vand.u32 2147483647, %v1886_v4  ;;  %v793_v38 = vand.u32 2147483648, %v1886_v4 }
 0x1f4   : > { %v1376_v60 = vpop.eup %1375  ;;  %v694_v18 = vadd.f32 %v1370_v55, %v693_v12  ;;  %v1896_v3 = vadd.f32 1.0, %v1374_v10  ;;  %vm817_vm9 = vweird.f32 %v1884_v2  ;;  %vm787_vm11 = vweird.f32 %v1886_v4 }
 0x1f5   : > { %v1378_v17 = vpop.eup %1377  ;;  %v768_v19 = vmul.f32 %v1376_v60, %v1877_v47  ;;  %vm773_vm5 = vweird.f32 %v1376_v60  ;;  %v824_v5 = vor.u32 1.1754944e-38, %v823_v46  ;;  %vm822_vm12 = vcmp.eq.f32.partialorder %v821_v41, 8.507059e+37 }
 0x1f6   : > { %v1380_v23 = vpop.eup %1379  ;;  %v698_v24 = vsel %vm697_vm1, %v1370_v55, %v694_v18  ;;  %1387 = vrcp.f32 %v1896_v3  ;;  %v1904_v31 = vadd.f32 1.0, %v1378_v17  ;;  %vm774_vm6 = vmor %vm772_vm3, %vm773_vm5  ;;  %v836_v8 = vand.u32 2147483647, %v1896_v3 }
 0x1f7   : > { %v769_v25 = vsub.f32 1.0, %v768_v19  ;;  %v1382_v29 = vpop.eup %1381  ;;  %v703_v16 = vsel %vm700_vm2, %v702_v20, %v698_v24  ;;  %v1910_v44 = vadd.f32 1.0, %v1380_v23  ;;  %v794_v11 = vor.u32 1.1754944e-38, %v793_v38 }
 0x1f8   : > { %v1384_v33 = vpop.eup %1383  ;;  %v1313_v35 = vmul.f32 -1.442695, %v703_v16  ;;  %v813_v39 = vmul.f32 %v1382_v29, %v1884_v2  ;;  %vm818_vm7 = vweird.f32 %v1382_v29  ;;  %vm792_vm14 = vcmp.eq.f32.partialorder %v791_v54, 8.507059e+37 }
 0x1f9   : > { %v770_v36 = vmul.f32 %v1376_v60, %v769_v25  ;;  %v783_v42 = vmul.f32 %v1384_v33, %v1886_v4  ;;  %v1386_v49 = vpop.eup %1385  ;;  %vm788_vm8 = vweird.f32 %v1384_v33  ;;  %vm819_vm10 = vmor %vm817_vm9, %vm818_vm7  ;;  %v838_v57 = vand.u32 2147483648, %v1896_v3 }
 0x1fa   : > { %1389 = vpow2.f32 %v1313_v35  ;;  %v814_v32 = vsub.f32 1.0, %v813_v39  ;;  %v1923_v62 = vadd.f32 1.0, %v1386_v49  ;;  %vm789_vm13 = vmor %vm787_vm11, %vm788_vm8  ;;  %vm832_vm1 = vweird.f32 %v1896_v3 }
 0x1fb   : > { %v771_v45 = vadd.f32 %v1376_v60, %v770_v36  ;;  %v784_v50 = vsub.f32 1.0, %v783_v42  ;;  %1391 = vrcp.f32 %v1904_v31  ;;  %vm1943_vm2 = vcmp.eq.f32.partialorder %v836_v8, 8.507059e+37 }
 0x1fc   : > { %v815_v59 = vmul.f32 %v1382_v29, %v814_v32  ;;  %v1388_v63 = vpop.eup %1387  ;;  %1393 = vrcp.f32 %v1910_v44  ;;  %vm862_vm3 = vweird.f32 %v1904_v31  ;;  %v839_v26 = vor.u32 1.1754944e-38, %v838_v57 }
 0x1fd   : > { %v775_v55 = vsel %vm774_vm6, %v1376_v60, %v771_v45  ;;  %v785_v1 = vmul.f32 %v1384_v33, %v784_v50  ;;  %v828_v52 = vmul.f32 %v1388_v63, %v1896_v3  ;;  %1395 = vrcp.f32 %v1923_v62 }
 0x1fe   : > { %v780_v0 = vsel %vm1899_vm4, %v779_v15, %v775_v55  ;;  %v816_v47 = vadd.f32 %v1382_v29, %v815_v59  ;;  %vm833_vm15 = vweird.f32 %v1388_v63  ;;  %v806_v36 = vand.u32 2147483647, %v1923_v62 }
 0x1ff   : > { %898 = vperm.xlu2 %1332, %v780_v0   ;;  %888 = vst.msk [vmem:[%s1916_s19] sm:$0xff] %vm887_vm0, %v780_v0  ;;  %v786_v7 = vadd.f32 %v1384_v33, %v785_v1  ;;  %v829_v2 = vsub.f32 1.0, %v828_v52  ;;  %vm834_vm4 = vmor %vm832_vm1, %vm833_vm15  ;;  %v808_v42 = vand.u32 2147483648, %v1923_v62  ;;  %v883_v49 = vand.u32 2147483648, %v1910_v44 }
 0x200   : > { %v1390_v9 = vpop.eup %1389  ;;  %v820_v10 = vsel %vm819_vm10, %v1382_v29, %v816_v47  ;;  %v868_v29 = vand.u32 2147483648, %v1904_v31  ;;  %v881_v38 = vand.u32 2147483647, %v1910_v44  ;;  %vm877_vm10 = vweird.f32 %v1910_v44 }
 0x201   : > { %v1392_v12 = vpop.eup %1391  ;;  %v825_v60 = vsel %vm822_vm12, %v824_v5, %v820_v10  ;;  %v790_v13 = vsel %vm789_vm13, %v1384_v33, %v786_v7  ;;  %v830_v4 = vmul.f32 %v1388_v63, %v829_v2  ;;  %v1948_v22 = vadd.f32 1.0, %v1390_v9 }
 0x202   : > { %891 = vst.msk [vmem:[%s1916_s19 + $0x18] sm:$0xff] %vm887_vm0, %v825_v60  ;;  %v795_v17 = vsel %vm792_vm14, %v794_v11, %v790_v13  ;;  %v858_v18 = vmul.f32 %v1392_v12, %v1904_v31  ;;  %v1394_v19 = vpop.eup %1393  ;;  %v866_v33 = vand.u32 2147483647, %v1904_v31  ;;  %vm863_vm5 = vweird.f32 %v1392_v12 }
 0x203   : > { %903 = vperm.xlu0 %1333, %v795_v17   ;;  %889 = vst.msk [vmem:[%s1916_s19 + $0x8] sm:$0xff] %vm887_vm0, %v795_v17  ;;  %v1396_v23 = vpop.eup %1395  ;;  %v831_v24 = vadd.f32 %v1388_v63, %v830_v4  ;;  %v873_v16 = vmul.f32 %v1394_v19, %v1910_v44  ;;  %1397 = vrcp.f32 %v1948_v22  ;;  %v869_v46 = vor.u32 1.1754944e-38, %v868_v29  ;;  %vm864_vm8 = vmor %vm862_vm3, %vm863_vm5  ;;  %v1403_v29 = vld [vmem:[%s1561_s20 + $0x1a0] sm:$0xff] }
 0x204   : > { %v859_v25 = vsub.f32 1.0, %v858_v18  ;;  %v798_v3 = vmul.f32 %v1396_v23, %v1923_v62  ;;  %vm878_vm6 = vweird.f32 %v1394_v19  ;;  %vm803_vm7 = vweird.f32 %v1396_v23 }
 0x205   : > { %v835_v35 = vsel %vm834_vm4, %v1388_v63, %v831_v24  ;;  %v874_v45 = vsub.f32 1.0, %v873_v16  ;;  %vm867_vm9 = vcmp.eq.f32.partialorder %v866_v33, 8.507059e+37  ;;  %vm802_vm11 = vweird.f32 %v1923_v62  ;;  %vm879_vm12 = vmor %vm877_vm10, %vm878_vm6  ;;  %v1401_v24 = vld [vmem:[%s1561_s20 + $0x190] sm:$0xff] }
 0x206   : > { %v860_v39 = vmul.f32 %v1392_v12, %v859_v25  ;;  %v840_v15 = vsel %vm1943_vm2, %v839_v26, %v835_v35  ;;  %v799_v41 = vsub.f32 1.0, %v798_v3  ;;  %vm804_vm13 = vmor %vm802_vm11, %vm803_vm7  ;;  %v809_v47 = vor.u32 1.1754944e-38, %v808_v42  ;;  %v1404_v26 = vld [vmem:[%s1561_s20 + $0x1a8] sm:$0xff]  ;;  %v1405_v33 = vld [vmem:[%s1561_s20 + $0x1b0] sm:$0xff] }
 0x207   : > { %913 = vperm.xlu2 %1332, %v825_v60   ;;  %892 = vst.msk [vmem:[%s1916_s19 + $0x20] sm:$0xff] %vm887_vm0, %v840_v15  ;;  %v875_v54 = vmul.f32 %v1394_v19, %v874_v45  ;;  %v884_v52 = vor.u32 1.1754944e-38, %v883_v49  ;;  %vm807_vm14 = vcmp.eq.f32.partialorder %v806_v36, 8.507059e+37  ;;  %vm882_vm15 = vcmp.eq.f32.partialorder %v881_v38, 8.507059e+37  ;;  %v1406_v36 = vld [vmem:[%s1561_s20 + $0x1b8] sm:$0xff]  ;;  %v1408_v42 = vld [vmem:[%s1561_s20 + $0x1c8] sm:$0xff] }
 0x208   : > { %v861_v32 = vadd.f32 %v1392_v12, %v860_v39  ;;  %v800_v50 = vmul.f32 %v1396_v23, %v799_v41  ;;  %v853_v9 = vand.u32 2147483648, %v1948_v22  ;;  %v851_v11 = vand.u32 2147483647, %v1948_v22  ;;  %v1410_v49 = vld [vmem:[%s1561_s20 + $0x1d8] sm:$0xff] }
 0x209   : > { %v1398_v59 = vpop.eup %1397  ;;  %v876_v1 = vadd.f32 %v1394_v19, %v875_v54  ;;  %vm847_vm2 = vweird.f32 %v1948_v22  ;;  %v1411_v54 = vld [vmem:[%s1561_s20 + $0x1e0] sm:$0xff] }
 0x20a   : > { %v865_v55 = vsel %vm864_vm8, %v1392_v12, %v861_v32  ;;  %v801_v63 = vadd.f32 %v1396_v23, %v800_v50  ;;  %v843_v31 = vmul.f32 %v1398_v59, %v1948_v22  ;;  %vm848_vm1 = vweird.f32 %v1398_v59  ;;  %v1409_v32 = vld [vmem:[%s1561_s20 + $0x1d0] sm:$0xff] }
 0x20b   : > { %v870_v0 = vsel %vm867_vm9, %v869_v46, %v865_v55  ;;  %v880_v44 = vsel %vm879_vm12, %v1394_v19, %v876_v1  ;;  %vm849_vm3 = vmor %vm847_vm2, %vm848_vm1  ;;  %v854_v12 = vor.u32 1.1754944e-38, %v853_v9  ;;  %vm852_vm4 = vcmp.eq.f32.partialorder %v851_v11, 8.507059e+37  ;;  %v1412_v55 = vld [vmem:[%s1561_s20 + $0x1e8] sm:$0xff]  ;;  %v1418_v9 = vld [vmem:[%s1561_s20 + $0x218] sm:$0xff] }
 0x20c   : > { %894 = vst.msk [vmem:[%s1916_s19 + $0x30] sm:$0xff] %vm887_vm0, %v870_v0  ;;  %v805_v5 = vsel %vm804_vm13, %v1396_v23, %v801_v63  ;;  %v844_v62 = vsub.f32 1.0, %v843_v31  ;;  %v885_v8 = vsel %vm882_vm15, %v884_v52, %v880_v44  ;;  %v1415_v52 = vld [vmem:[%s1561_s20 + $0x200] sm:$0xff]  ;;  %v1416_v44 = vld [vmem:[%s1561_s20 + $0x208] sm:$0xff] }
 0x20d   : > { %v810_v7 = vsel %vm807_vm14, %v809_v47, %v805_v5  ;;  %895 = vst.msk [vmem:[%s1916_s19 + $0x38] sm:$0xff] %vm887_vm0, %v885_v8  ;;  %v1414_v47 = vld [vmem:[%s1561_s20 + $0x1f8] sm:$0xff]  ;;  %v1419_v11 = vld [vmem:[%s1561_s20 + $0x220] sm:$0xff] }
 0x20e   : > { %908 = vperm.xlu1 %1334, %v810_v7   ;;  %890 = vst.msk [vmem:[%s1916_s19 + $0x10] sm:$0xff] %vm887_vm0, %v810_v7  ;;  %v845_v10 = vmul.f32 %v1398_v59, %v844_v62  ;;  %v1417_v62 = vld [vmem:[%s1561_s20 + $0x210] sm:$0xff] }
 0x20f   : > { %918 = vperm.xlu2 %1332, %v840_v15   ;;  %v1407_v15 = vld [vmem:[%s1561_s20 + $0x1c0] sm:$0xff] }
 0x210   : > { %v846_v2 = vadd.f32 %v1398_v59, %v845_v10 }
 0x212   : > { %v850_v60 = vsel %vm849_vm3, %v1398_v59, %v846_v2 }
 0x213   : > { %v855_v13 = vsel %vm852_vm4, %v854_v12, %v850_v60  ;;  %v1420_v12 = vld [vmem:[%s1561_s20 + $0x228] sm:$0xff] }
 0x214   : > { %893 = vst.msk [vmem:[%s1916_s19 + $0x28] sm:$0xff] %vm887_vm0, %v855_v13 }
 0x216   : > { %923 = vperm.xlu1 %1334, %v855_v13   ;;  %v1421_v13 = vld [vmem:[%s1561_s20 + $0x230] sm:$0xff] }
 0x217   : > { %928 = vperm.xlu2 %1332, %v870_v0   ;;  %v1413_v0 = vld [vmem:[%s1561_s20 + $0x1f0] sm:$0xff] }
 0x21e   : > { %933 = vperm.xlu1 %1334, %v885_v8  }
 0x259   : > { %v899_v57 = vpop.permute.xlu2 %898 }
 0x25a   : > { %v936_v17 = vmul.f32 %v899_v57, %v1649_v27  ;;  %v937_v4 = vmul.f32 %v899_v57, %v1652_v28  ;;  %v938_v18 = vmul.f32 %v899_v57, %v1657_v34  ;;  %v939_v19 = vmul.f32 %v899_v57, %v1664_v40 }
 0x25b   : > { %v940_v20 = vmul.f32 %v899_v57, %v1672_v51  ;;  %v941_v22 = vmul.f32 %v899_v57, %v1680_v61  ;;  %v942_v23 = vmul.f32 %v899_v57, %v1687_v6  ;;  %v943_v27 = vmul.f32 %v899_v57, %v1694_v14 }
 0x25c   : > { %1064 = vst [vmem:[%s1985_s23] sm:$0xff] %v936_v17  ;;  %v944_v28 = vmul.f32 %v899_v57, %v1700_v21  ;;  %v945_v34 = vmul.f32 %v899_v57, %v1706_v30  ;;  %v946_v40 = vmul.f32 %v899_v57, %v1712_v37  ;;  %v947_v51 = vmul.f32 %v899_v57, %v1717_v43  ;;  %v1399_v37 = vld [vmem:[%s1561_s20 + $0x180] sm:$0xff]  ;;  %v1422_v17 = vld [vmem:[%s1561_s20 + $0x238] sm:$0xff] }
 0x25d   : > { %1065 = vst [vmem:[%s1985_s23 + $0x8] sm:$0xff] %v937_v4  ;;  %v948_v61 = vmul.f32 %v899_v57, %v1722_v48  ;;  %v949_v6 = vmul.f32 %v899_v57, %v1727_v53  ;;  %v950_v21 = vmul.f32 %v899_v57, %v1731_v56  ;;  %v951_v30 = vmul.f32 %v899_v57, %v1735_v58  ;;  %v1400_v48 = vld [vmem:[%s1561_s20 + $0x188] sm:$0xff]  ;;  %v1402_v58 = vld [vmem:[%s1561_s20 + $0x198] sm:$0xff] }
 0x25e   : > { %1066 = vst [vmem:[%s1985_s23 + $0x10] sm:$0xff] %v938_v18  ;;  %v1423_v18 = vld [vmem:[%s1561_s20 + $0x240] sm:$0xff] }
 0x25f   : > { %1067 = vst [vmem:[%s1985_s23 + $0x18] sm:$0xff] %v939_v19 }
 0x260   : > { %1068 = vst [vmem:[%s1985_s23 + $0x20] sm:$0xff] %v940_v20  ;;  %v1424_v20 = vld [vmem:[%s1561_s20 + $0x248] sm:$0xff] }
 0x261   : > { %1069 = vst [vmem:[%s1985_s23 + $0x28] sm:$0xff] %v941_v22  ;;  %v914_v14 = vpop.permute.xlu2 %913 }
 0x262   : > { %1070 = vst [vmem:[%s1985_s23 + $0x30] sm:$0xff] %v942_v23  ;;  %v984_v43 = vmul.f32 %v1399_v37, %v914_v14  ;;  %v985_v53 = vmul.f32 %v1400_v48, %v914_v14  ;;  %v986_v56 = vmul.f32 %v1401_v24, %v914_v14  ;;  %v987_v25 = vmul.f32 %v1402_v58, %v914_v14  ;;  %v1425_v23 = vld [vmem:[%s1561_s20 + $0x250] sm:$0xff]  ;;  %v1430_v37 = vld [vmem:[%s1561_s20 + $0x278] sm:$0xff]  ;;  %v1431_v48 = vld [vmem:[%s1561_s20 + $0x300] sm:$0xff] }
 0x263   : > { %1071 = vst [vmem:[%s1985_s23 + $0x38] sm:$0xff] %v943_v27  ;;  %v988_v16 = vmul.f32 %v1403_v29, %v914_v14  ;;  %v989_v3 = vmul.f32 %v1404_v26, %v914_v14  ;;  %v990_v35 = vmul.f32 %v1405_v33, %v914_v14  ;;  %v991_v39 = vmul.f32 %v1406_v36, %v914_v14  ;;  %v1432_v24 = vld [vmem:[%s1561_s20 + $0x308] sm:$0xff]  ;;  %v1433_v58 = vld [vmem:[%s1561_s20 + $0x310] sm:$0xff]  ;;  %v1434_v29 = vld [vmem:[%s1561_s20 + $0x318] sm:$0xff] }
 0x264   : > { %1072 = vst [vmem:[%s1985_s23 + $0x40] sm:$0xff] %v944_v28  ;;  %v992_v41 = vmul.f32 %v1407_v15, %v914_v14  ;;  %v993_v45 = vmul.f32 %v1408_v42, %v914_v14  ;;  %v994_v46 = vmul.f32 %v1409_v32, %v914_v14  ;;  %v995_v50 = vmul.f32 %v1410_v49, %v914_v14  ;;  %v1426_v28 = vld [vmem:[%s1561_s20 + $0x258] sm:$0xff]  ;;  %v1435_v26 = vld [vmem:[%s1561_s20 + $0x320] sm:$0xff]  ;;  %v1436_v33 = vld [vmem:[%s1561_s20 + $0x328] sm:$0xff] }
 0x265   : > { %1073 = vst [vmem:[%s1985_s23 + $0x48] sm:$0xff] %v945_v34  ;;  %v996_v38 = vmul.f32 %v1411_v54, %v914_v14  ;;  %v997_v59 = vmul.f32 %v1412_v55, %v914_v14  ;;  %v998_v1 = vmul.f32 %v1413_v0, %v914_v14  ;;  %v999_v31 = vmul.f32 %v1414_v47, %v914_v14  ;;  %v1437_v36 = vld [vmem:[%s1561_s20 + $0x330] sm:$0xff]  ;;  %v1438_v15 = vld [vmem:[%s1561_s20 + $0x338] sm:$0xff]  ;;  %v1439_v42 = vld [vmem:[%s1561_s20 + $0x340] sm:$0xff] }
 0x266   : > { %1074 = vst [vmem:[%s1985_s23 + $0x50] sm:$0xff] %v946_v40  ;;  %v1427_v40 = vld [vmem:[%s1561_s20 + $0x260] sm:$0xff]  ;;  %v1440_v32 = vld [vmem:[%s1561_s20 + $0x348] sm:$0xff]  ;;  %v1441_v49 = vld [vmem:[%s1561_s20 + $0x350] sm:$0xff] }
 0x267   : > { %1075 = vst [vmem:[%s1985_s23 + $0x58] sm:$0xff] %v947_v51  ;;  %v1442_v54 = vld [vmem:[%s1561_s20 + $0x358] sm:$0xff]  ;;  %v1443_v55 = vld [vmem:[%s1561_s20 + $0x360] sm:$0xff]  ;;  %v1445_v47 = vld [vmem:[%s1561_s20 + $0x370] sm:$0xff] }
 0x268   : > { %1076 = vst [vmem:[%s1985_s23 + $0x60] sm:$0xff] %v948_v61  ;;  %v1428_v61 = vld [vmem:[%s1561_s20 + $0x268] sm:$0xff] }
 0x269   : > { %1077 = vst [vmem:[%s1985_s23 + $0x68] sm:$0xff] %v949_v6  ;;  %v919_v63 = vpop.permute.xlu2 %918 }
 0x26a   : > { %1078 = vst [vmem:[%s1985_s23 + $0x70] sm:$0xff] %v950_v21  ;;  %v1000_v5 = vmul.f32 %v1415_v52, %v919_v63  ;;  %v1001_v7 = vmul.f32 %v1416_v44, %v919_v63  ;;  %v1002_v8 = vmul.f32 %v1417_v62, %v919_v63  ;;  %v1003_v10 = vmul.f32 %v1418_v9, %v919_v63  ;;  %v1429_v21 = vld [vmem:[%s1561_s20 + $0x270] sm:$0xff]  ;;  %v1446_v52 = vld [vmem:[%s1561_s20 + $0x378] sm:$0xff]  ;;  %v1447_v44 = vld [vmem:[%s1561_s20 + $0x80] sm:$0xff] }
 0x26b   : > { %1079 = vst [vmem:[%s1985_s23 + $0x78] sm:$0xff] %v951_v30  ;;  %v1004_v2 = vmul.f32 %v1419_v11, %v919_v63  ;;  %v1005_v60 = vmul.f32 %v1420_v12, %v919_v63  ;;  %v1006_v57 = vmul.f32 %v1421_v13, %v919_v63  ;;  %v1007_v4 = vmul.f32 %v1422_v17, %v919_v63  ;;  %v1448_v62 = vld [vmem:[%s1561_s20 + $0x88] sm:$0xff]  ;;  %v1449_v9 = vld [vmem:[%s1561_s20 + $0x90] sm:$0xff]  ;;  %v1450_v11 = vld [vmem:[%s1561_s20 + $0x98] sm:$0xff] }
 0x26c   : > { %1112 = vst [vmem:[%s1985_s23 + $0x180] sm:$0xff] %v984_v43  ;;  %v1008_v19 = vmul.f32 %v1423_v18, %v919_v63  ;;  %v1009_v22 = vmul.f32 %v1424_v20, %v919_v63  ;;  %v1010_v27 = vmul.f32 %v1425_v23, %v919_v63  ;;  %v1011_v34 = vmul.f32 %v1426_v28, %v919_v63  ;;  %v1451_v12 = vld [vmem:[%s1561_s20 + $0xa0] sm:$0xff]  ;;  %v1452_v13 = vld [vmem:[%s1561_s20 + $0xa8] sm:$0xff]  ;;  %v1453_v17 = vld [vmem:[%s1561_s20 + $0xb0] sm:$0xff] }
 0x26d   : > { %1113 = vst [vmem:[%s1985_s23 + $0x188] sm:$0xff] %v985_v53  ;;  %v1012_v51 = vmul.f32 %v1427_v40, %v919_v63  ;;  %v1013_v6 = vmul.f32 %v1428_v61, %v919_v63  ;;  %v1014_v30 = vmul.f32 %v1429_v21, %v919_v63  ;;  %v1015_v43 = vmul.f32 %v1430_v37, %v919_v63  ;;  %v1444_v63 = vld [vmem:[%s1561_s20 + $0x368] sm:$0xff]  ;;  %v1454_v18 = vld [vmem:[%s1561_s20 + $0xb8] sm:$0xff]  ;;  %v1455_v20 = vld [vmem:[%s1561_s20 + $0xc0] sm:$0xff] }
 0x26e   : > { %1114 = vst [vmem:[%s1985_s23 + $0x190] sm:$0xff] %v986_v56  ;;  %v1456_v23 = vld [vmem:[%s1561_s20 + $0xc8] sm:$0xff]  ;;  %v1457_v28 = vld [vmem:[%s1561_s20 + $0xd0] sm:$0xff]  ;;  %v1458_v40 = vld [vmem:[%s1561_s20 + $0xd8] sm:$0xff] }
 0x26f   : > { %1115 = vst [vmem:[%s1985_s23 + $0x198] sm:$0xff] %v987_v25  ;;  %v1459_v61 = vld [vmem:[%s1561_s20 + $0xe0] sm:$0xff]  ;;  %v1461_v37 = vld [vmem:[%s1561_s20 + $0xf0] sm:$0xff] }
 0x270   : > { %1116 = vst [vmem:[%s1985_s23 + $0x1a0] sm:$0xff] %v988_v16 }
 0x271   : > { %1117 = vst [vmem:[%s1985_s23 + $0x1a8] sm:$0xff] %v989_v3  ;;  %v929_v14 = vpop.permute.xlu2 %928 }
 0x272   : > { %1118 = vst [vmem:[%s1985_s23 + $0x1b0] sm:$0xff] %v990_v35  ;;  %v1032_v53 = vmul.f32 %v1431_v48, %v929_v14  ;;  %v1033_v56 = vmul.f32 %v1432_v24, %v929_v14  ;;  %v1034_v25 = vmul.f32 %v1433_v58, %v929_v14  ;;  %v1035_v16 = vmul.f32 %v1434_v29, %v929_v14  ;;  %v1462_v48 = vld [vmem:[%s1561_s20 + $0xf8] sm:$0xff]  ;;  %v1463_v24 = vld [vmem:[%s1561_s20 + $0x100] sm:$0xff]  ;;  %v1464_v58 = vld [vmem:[%s1561_s20 + $0x108] sm:$0xff] }
 0x273   : > { %1119 = vst [vmem:[%s1985_s23 + $0x1b8] sm:$0xff] %v991_v39  ;;  %v1036_v3 = vmul.f32 %v1435_v26, %v929_v14  ;;  %v1037_v35 = vmul.f32 %v1436_v33, %v929_v14  ;;  %v1038_v39 = vmul.f32 %v1437_v36, %v929_v14  ;;  %v1045_v0 = vmul.f32 %v1444_v63, %v929_v14  ;;  %v1465_v29 = vld [vmem:[%s1561_s20 + $0x110] sm:$0xff]  ;;  %v1466_v26 = vld [vmem:[%s1561_s20 + $0x118] sm:$0xff]  ;;  %v1467_v33 = vld [vmem:[%s1561_s20 + $0x120] sm:$0xff] }
 0x274   : > { %1120 = vst [vmem:[%s1985_s23 + $0x1c0] sm:$0xff] %v992_v41  ;;  %v1039_v41 = vmul.f32 %v1438_v15, %v929_v14  ;;  %v1468_v36 = vld [vmem:[%s1561_s20 + $0x128] sm:$0xff]  ;;  %v1469_v15 = vld [vmem:[%s1561_s20 + $0x130] sm:$0xff]  ;;  %v1475_v63 = vld [vmem:[%s1561_s20 + $0x160] sm:$0xff] }
 0x275   : > { %1121 = vst [vmem:[%s1985_s23 + $0x1c8] sm:$0xff] %v993_v45  ;;  %v1040_v45 = vmul.f32 %v1439_v42, %v929_v14  ;;  %v1470_v42 = vld [vmem:[%s1561_s20 + $0x138] sm:$0xff] }
 0x276   : > { %1122 = vst [vmem:[%s1985_s23 + $0x1d0] sm:$0xff] %v994_v46  ;;  %v1041_v46 = vmul.f32 %v1440_v32, %v929_v14  ;;  %v1471_v32 = vld [vmem:[%s1561_s20 + $0x140] sm:$0xff] }
 0x277   : > { %1123 = vst [vmem:[%s1985_s23 + $0x1d8] sm:$0xff] %v995_v50  ;;  %v1042_v50 = vmul.f32 %v1441_v49, %v929_v14  ;;  %v1472_v49 = vld [vmem:[%s1561_s20 + $0x148] sm:$0xff] }
 0x278   : > { %1124 = vst [vmem:[%s1985_s23 + $0x1e0] sm:$0xff] %v996_v38  ;;  %v1043_v38 = vmul.f32 %v1442_v54, %v929_v14  ;;  %v1473_v54 = vld [vmem:[%s1561_s20 + $0x150] sm:$0xff] }
 0x279   : > { %1125 = vst [vmem:[%s1985_s23 + $0x1e8] sm:$0xff] %v997_v59  ;;  %v1044_v59 = vmul.f32 %v1443_v55, %v929_v14  ;;  %v1474_v55 = vld [vmem:[%s1561_s20 + $0x158] sm:$0xff] }
 0x27a   : > { %1126 = vst [vmem:[%s1985_s23 + $0x1f0] sm:$0xff] %v998_v1  ;;  %v904_v1 = vpop.permute.xlu0 %903 }
 0x27b   : > { %1127 = vst [vmem:[%s1985_s23 + $0x1f8] sm:$0xff] %v999_v31  ;;  %v1046_v31 = vmul.f32 %v1445_v47, %v929_v14 }
 0x27c   : > { %1128 = vst [vmem:[%s1985_s23 + $0x200] sm:$0xff] %v1000_v5  ;;  %v1047_v5 = vmul.f32 %v1446_v52, %v929_v14  ;;  %v1460_v14 = vld [vmem:[%s1561_s20 + $0xe8] sm:$0xff]  ;;  %v1477_v52 = vld [vmem:[%s1561_s20 + $0x170] sm:$0xff] }
 0x27d   : > { %1129 = vst [vmem:[%s1985_s23 + $0x208] sm:$0xff] %v1001_v7  ;;  %v952_v7 = vmul.f32 %v1447_v44, %v904_v1  ;;  %v965_v21 = vmul.f32 %v1460_v14, %v904_v1  ;;  %v1478_v44 = vld [vmem:[%s1561_s20 + $0x178] sm:$0xff]  ;;  %v1491_v14 = vld [vmem:[%s1561_s20 + $0x2e0] sm:$0xff] }
 0x27e   : > { %1130 = vst [vmem:[%s1985_s23 + $0x210] sm:$0xff] %v1002_v8  ;;  %v953_v8 = vmul.f32 %v1448_v62, %v904_v1  ;;  %v1479_v62 = vld [vmem:[%s1561_s20 + $0x280] sm:$0xff] }
 0x27f   : > { %1131 = vst [vmem:[%s1985_s23 + $0x218] sm:$0xff] %v1003_v10  ;;  %v954_v10 = vmul.f32 %v1449_v9, %v904_v1  ;;  %v1480_v9 = vld [vmem:[%s1561_s20 + $0x288] sm:$0xff] }
 0x280   : > { %1132 = vst [vmem:[%s1985_s23 + $0x220] sm:$0xff] %v1004_v2  ;;  %v955_v2 = vmul.f32 %v1450_v11, %v904_v1  ;;  %v1481_v11 = vld [vmem:[%s1561_s20 + $0x290] sm:$0xff] }
 0x281   : > { %1133 = vst [vmem:[%s1985_s23 + $0x228] sm:$0xff] %v1005_v60  ;;  %v956_v60 = vmul.f32 %v1451_v12, %v904_v1  ;;  %v1482_v12 = vld [vmem:[%s1561_s20 + $0x298] sm:$0xff] }
 0x282   : > { %1134 = vst [vmem:[%s1985_s23 + $0x230] sm:$0xff] %v1006_v57  ;;  %v957_v57 = vmul.f32 %v1452_v13, %v904_v1  ;;  %v1483_v13 = vld [vmem:[%s1561_s20 + $0x2a0] sm:$0xff] }
 0x283   : > { %1135 = vst [vmem:[%s1985_s23 + $0x238] sm:$0xff] %v1007_v4  ;;  %v958_v4 = vmul.f32 %v1453_v17, %v904_v1  ;;  %v1484_v17 = vld [vmem:[%s1561_s20 + $0x2a8] sm:$0xff] }
 0x284   : > { %1136 = vst [vmem:[%s1985_s23 + $0x240] sm:$0xff] %v1008_v19  ;;  %v959_v19 = vmul.f32 %v1454_v18, %v904_v1  ;;  %v1485_v18 = vld [vmem:[%s1561_s20 + $0x2b0] sm:$0xff] }
 0x285   : > { %1137 = vst [vmem:[%s1985_s23 + $0x248] sm:$0xff] %v1009_v22  ;;  %v960_v22 = vmul.f32 %v1455_v20, %v904_v1  ;;  %v1486_v20 = vld [vmem:[%s1561_s20 + $0x2b8] sm:$0xff] }
 0x286   : > { %1138 = vst [vmem:[%s1985_s23 + $0x250] sm:$0xff] %v1010_v27  ;;  %v961_v27 = vmul.f32 %v1456_v23, %v904_v1  ;;  %v1487_v23 = vld [vmem:[%s1561_s20 + $0x2c0] sm:$0xff] }
 0x287   : > { %1139 = vst [vmem:[%s1985_s23 + $0x258] sm:$0xff] %v1011_v34  ;;  %v962_v34 = vmul.f32 %v1457_v28, %v904_v1  ;;  %v1488_v28 = vld [vmem:[%s1561_s20 + $0x2c8] sm:$0xff] }
 0x288   : > { %1140 = vst [vmem:[%s1985_s23 + $0x260] sm:$0xff] %v1012_v51  ;;  %v963_v51 = vmul.f32 %v1458_v40, %v904_v1  ;;  %v1489_v40 = vld [vmem:[%s1561_s20 + $0x2d0] sm:$0xff] }
 0x289   : > { %1141 = vst [vmem:[%s1985_s23 + $0x268] sm:$0xff] %v1013_v6  ;;  %v964_v6 = vmul.f32 %v1459_v61, %v904_v1  ;;  %v1490_v61 = vld [vmem:[%s1561_s20 + $0x2d8] sm:$0xff] }
 0x28a   : > { %1142 = vst [vmem:[%s1985_s23 + $0x270] sm:$0xff] %v1014_v30  ;;  %v909_v30 = vpop.permute.xlu1 %908 }
 0x28b   : > { %1143 = vst [vmem:[%s1985_s23 + $0x278] sm:$0xff] %v1015_v43  ;;  %v966_v43 = vmul.f32 %v1461_v37, %v904_v1 }
 0x28c   : > { %1160 = vst [vmem:[%s1985_s23 + $0x300] sm:$0xff] %v1032_v53  ;;  %v967_v53 = vmul.f32 %v1462_v48, %v904_v1  ;;  %v1476_v1 = vld [vmem:[%s1561_s20 + $0x168] sm:$0xff]  ;;  %v1493_v48 = vld [vmem:[%s1561_s20 + $0x2f0] sm:$0xff] }
 0x28d   : > { %1161 = vst [vmem:[%s1985_s23 + $0x308] sm:$0xff] %v1033_v56  ;;  %v968_v56 = vmul.f32 %v1463_v24, %v909_v30  ;;  %v981_v47 = vmul.f32 %v1476_v1, %v909_v30  ;;  %v1494_v24 = vld [vmem:[%s1561_s20 + $0x2f8] sm:$0xff]  ;;  %v1507_v1 = vld [vmem:[%s1561_s20 + $0x3e0] sm:$0xff] }
 0x28e   : > { %1162 = vst [vmem:[%s1985_s23 + $0x310] sm:$0xff] %v1034_v25  ;;  %v969_v25 = vmul.f32 %v1464_v58, %v909_v30  ;;  %v1495_v58 = vld [vmem:[%s1561_s20 + $0x380] sm:$0xff] }
 0x28f   : > { %1163 = vst [vmem:[%s1985_s23 + $0x318] sm:$0xff] %v1035_v16  ;;  %v970_v16 = vmul.f32 %v1465_v29, %v909_v30  ;;  %v1496_v29 = vld [vmem:[%s1561_s20 + $0x388] sm:$0xff] }
 0x290   : > { %1164 = vst [vmem:[%s1985_s23 + $0x320] sm:$0xff] %v1036_v3  ;;  %v971_v3 = vmul.f32 %v1466_v26, %v909_v30  ;;  %v1497_v26 = vld [vmem:[%s1561_s20 + $0x390] sm:$0xff] }
 0x291   : > { %1165 = vst [vmem:[%s1985_s23 + $0x328] sm:$0xff] %v1037_v35  ;;  %v972_v35 = vmul.f32 %v1467_v33, %v909_v30  ;;  %v1498_v33 = vld [vmem:[%s1561_s20 + $0x398] sm:$0xff] }
 0x292   : > { %1166 = vst [vmem:[%s1985_s23 + $0x330] sm:$0xff] %v1038_v39  ;;  %v973_v39 = vmul.f32 %v1468_v36, %v909_v30  ;;  %v1499_v36 = vld [vmem:[%s1561_s20 + $0x3a0] sm:$0xff] }
 0x293   : > { %1167 = vst [vmem:[%s1985_s23 + $0x338] sm:$0xff] %v1039_v41  ;;  %v974_v41 = vmul.f32 %v1469_v15, %v909_v30  ;;  %v1500_v15 = vld [vmem:[%s1561_s20 + $0x3a8] sm:$0xff] }
 0x294   : > { %1168 = vst [vmem:[%s1985_s23 + $0x340] sm:$0xff] %v1040_v45  ;;  %v975_v45 = vmul.f32 %v1470_v42, %v909_v30  ;;  %v1501_v42 = vld [vmem:[%s1561_s20 + $0x3b0] sm:$0xff] }
 0x295   : > { %1169 = vst [vmem:[%s1985_s23 + $0x348] sm:$0xff] %v1041_v46  ;;  %v976_v46 = vmul.f32 %v1471_v32, %v909_v30  ;;  %v1502_v32 = vld [vmem:[%s1561_s20 + $0x3b8] sm:$0xff] }
 0x296   : > { %1170 = vst [vmem:[%s1985_s23 + $0x350] sm:$0xff] %v1042_v50  ;;  %v977_v50 = vmul.f32 %v1472_v49, %v909_v30  ;;  %v1503_v49 = vld [vmem:[%s1561_s20 + $0x3c0] sm:$0xff] }
 0x297   : > { %1171 = vst [vmem:[%s1985_s23 + $0x358] sm:$0xff] %v1043_v38  ;;  %v978_v38 = vmul.f32 %v1473_v54, %v909_v30  ;;  %v1504_v54 = vld [vmem:[%s1561_s20 + $0x3c8] sm:$0xff] }
 0x298   : > { %1172 = vst [vmem:[%s1985_s23 + $0x360] sm:$0xff] %v1044_v59  ;;  %v979_v59 = vmul.f32 %v1474_v55, %v909_v30  ;;  %v1505_v55 = vld [vmem:[%s1561_s20 + $0x3d0] sm:$0xff] }
 0x299   : > { %1173 = vst [vmem:[%s1985_s23 + $0x368] sm:$0xff] %v1045_v0  ;;  %v980_v0 = vmul.f32 %v1475_v63, %v909_v30  ;;  %v1506_v63 = vld [vmem:[%s1561_s20 + $0x3d8] sm:$0xff] }
 0x29a   : > { %1174 = vst [vmem:[%s1985_s23 + $0x370] sm:$0xff] %v1046_v31  ;;  %v924_v31 = vpop.permute.xlu1 %923 }
 0x29b   : > { %1175 = vst [vmem:[%s1985_s23 + $0x378] sm:$0xff] %v1047_v5  ;;  %v982_v5 = vmul.f32 %v1477_v52, %v909_v30 }
 0x29c   : > { %1080 = vst [vmem:[%s1985_s23 + $0x80] sm:$0xff] %v952_v7  ;;  %v983_v7 = vmul.f32 %v1478_v44, %v909_v30  ;;  %v1492_v30 = vld [vmem:[%s1561_s20 + $0x2e8] sm:$0xff] }
 0x29d   : > { %1081 = vst [vmem:[%s1985_s23 + $0x88] sm:$0xff] %v953_v8  ;;  %v1016_v8 = vmul.f32 %v1479_v62, %v924_v31  ;;  %v1029_v37 = vmul.f32 %v1492_v30, %v924_v31 }
 0x29e   : > { %1082 = vst [vmem:[%s1985_s23 + $0x90] sm:$0xff] %v954_v10  ;;  %v1017_v10 = vmul.f32 %v1480_v9, %v924_v31 }
 0x29f   : > { %1083 = vst [vmem:[%s1985_s23 + $0x98] sm:$0xff] %v955_v2  ;;  %v1018_v2 = vmul.f32 %v1481_v11, %v924_v31 }
 0x2a0   : > { %1084 = vst [vmem:[%s1985_s23 + $0xa0] sm:$0xff] %v956_v60  ;;  %v1019_v60 = vmul.f32 %v1482_v12, %v924_v31 }
 0x2a1   : > { %1085 = vst [vmem:[%s1985_s23 + $0xa8] sm:$0xff] %v957_v57  ;;  %v1020_v57 = vmul.f32 %v1483_v13, %v924_v31 }
 0x2a2   : > { %1086 = vst [vmem:[%s1985_s23 + $0xb0] sm:$0xff] %v958_v4  ;;  %v1021_v4 = vmul.f32 %v1484_v17, %v924_v31 }
 0x2a3   : > { %1087 = vst [vmem:[%s1985_s23 + $0xb8] sm:$0xff] %v959_v19  ;;  %v1022_v19 = vmul.f32 %v1485_v18, %v924_v31 }
 0x2a4   : > { %1088 = vst [vmem:[%s1985_s23 + $0xc0] sm:$0xff] %v960_v22  ;;  %v1023_v22 = vmul.f32 %v1486_v20, %v924_v31 }
 0x2a5   : > { %1089 = vst [vmem:[%s1985_s23 + $0xc8] sm:$0xff] %v961_v27  ;;  %v1024_v27 = vmul.f32 %v1487_v23, %v924_v31 }
 0x2a6   : > { %1090 = vst [vmem:[%s1985_s23 + $0xd0] sm:$0xff] %v962_v34  ;;  %v1025_v34 = vmul.f32 %v1488_v28, %v924_v31 }
 0x2a7   : > { %1091 = vst [vmem:[%s1985_s23 + $0xd8] sm:$0xff] %v963_v51  ;;  %v1026_v51 = vmul.f32 %v1489_v40, %v924_v31 }
 0x2a8   : > { %1092 = vst [vmem:[%s1985_s23 + $0xe0] sm:$0xff] %v964_v6  ;;  %v1027_v6 = vmul.f32 %v1490_v61, %v924_v31 }
 0x2a9   : > { %1093 = vst [vmem:[%s1985_s23 + $0xe8] sm:$0xff] %v965_v21  ;;  %v1028_v21 = vmul.f32 %v1491_v14, %v924_v31 }
 0x2aa   : > { %1094 = vst [vmem:[%s1985_s23 + $0xf0] sm:$0xff] %v966_v43  ;;  %v934_v43 = vpop.permute.xlu1 %933 }
 0x2ab   : > { %1095 = vst [vmem:[%s1985_s23 + $0xf8] sm:$0xff] %v967_v53  ;;  %v1030_v53 = vmul.f32 %v1493_v48, %v924_v31 }
 0x2ac   : > { %1096 = vst [vmem:[%s1985_s23 + $0x100] sm:$0xff] %v968_v56  ;;  %v1031_v56 = vmul.f32 %v1494_v24, %v924_v31  ;;  %v1508_v31 = vld [vmem:[%s1561_s20 + $0x3e8] sm:$0xff] }
 0x2ad   : > { %1097 = vst [vmem:[%s1985_s23 + $0x108] sm:$0xff] %v969_v25  ;;  %v1048_v25 = vmul.f32 %v1495_v58, %v934_v43  ;;  %v1061_v52 = vmul.f32 %v1508_v31, %v934_v43 }
 0x2ae   : > { %1098 = vst [vmem:[%s1985_s23 + $0x110] sm:$0xff] %v970_v16  ;;  %v1049_v16 = vmul.f32 %v1496_v29, %v934_v43 }
 0x2af   : > { %1099 = vst [vmem:[%s1985_s23 + $0x118] sm:$0xff] %v971_v3  ;;  %v1050_v3 = vmul.f32 %v1497_v26, %v934_v43 }
 0x2b0   : > { %1100 = vst [vmem:[%s1985_s23 + $0x120] sm:$0xff] %v972_v35  ;;  %v1051_v35 = vmul.f32 %v1498_v33, %v934_v43 }
 0x2b1   : > { %1101 = vst [vmem:[%s1985_s23 + $0x128] sm:$0xff] %v973_v39  ;;  %v1052_v39 = vmul.f32 %v1499_v36, %v934_v43 }
 0x2b2   : > { %1102 = vst [vmem:[%s1985_s23 + $0x130] sm:$0xff] %v974_v41  ;;  %v1053_v41 = vmul.f32 %v1500_v15, %v934_v43 }
 0x2b3   : > { %1103 = vst [vmem:[%s1985_s23 + $0x138] sm:$0xff] %v975_v45  ;;  %v1054_v45 = vmul.f32 %v1501_v42, %v934_v43 }
 0x2b4   : > { %1104 = vst [vmem:[%s1985_s23 + $0x140] sm:$0xff] %v976_v46  ;;  %v1055_v46 = vmul.f32 %v1502_v32, %v934_v43 }
 0x2b5   : > { %1105 = vst [vmem:[%s1985_s23 + $0x148] sm:$0xff] %v977_v50  ;;  %v1056_v50 = vmul.f32 %v1503_v49, %v934_v43 }
 0x2b6   : > { %1106 = vst [vmem:[%s1985_s23 + $0x150] sm:$0xff] %v978_v38  ;;  %v1057_v38 = vmul.f32 %v1504_v54, %v934_v43 }
 0x2b7   : > { %1107 = vst [vmem:[%s1985_s23 + $0x158] sm:$0xff] %v979_v59  ;;  %v1058_v59 = vmul.f32 %v1505_v55, %v934_v43 }
 0x2b8   : > { %1108 = vst [vmem:[%s1985_s23 + $0x160] sm:$0xff] %v980_v0  ;;  %v1059_v0 = vmul.f32 %v1506_v63, %v934_v43 }
 0x2b9   : > { %1109 = vst [vmem:[%s1985_s23 + $0x168] sm:$0xff] %v981_v47  ;;  %v1060_v47 = vmul.f32 %v1507_v1, %v934_v43 }
 0x2ba   : > { %1110 = vst [vmem:[%s1985_s23 + $0x170] sm:$0xff] %v982_v5  ;;  %v1509_v5 = vld [vmem:[%s1561_s20 + $0x3f0] sm:$0xff] }
 0x2bb   : > { %1111 = vst [vmem:[%s1985_s23 + $0x178] sm:$0xff] %v983_v7  ;;  %v1062_v44 = vmul.f32 %v1509_v5, %v934_v43  ;;  %v1510_v7 = vld [vmem:[%s1561_s20 + $0x3f8] sm:$0xff] }
 0x2bc   : > { %1144 = vst [vmem:[%s1985_s23 + $0x280] sm:$0xff] %v1016_v8  ;;  %v1063_v62 = vmul.f32 %v1510_v7, %v934_v43 }
 0x2bd   : > { %1145 = vst [vmem:[%s1985_s23 + $0x288] sm:$0xff] %v1017_v10 }
 0x2be   : > { %1146 = vst [vmem:[%s1985_s23 + $0x290] sm:$0xff] %v1018_v2 }
 0x2bf   : > { %1147 = vst [vmem:[%s1985_s23 + $0x298] sm:$0xff] %v1019_v60 }
 0x2c0   : > { %1148 = vst [vmem:[%s1985_s23 + $0x2a0] sm:$0xff] %v1020_v57 }
 0x2c1   : > { %1149 = vst [vmem:[%s1985_s23 + $0x2a8] sm:$0xff] %v1021_v4 }
 0x2c2   : > { %1150 = vst [vmem:[%s1985_s23 + $0x2b0] sm:$0xff] %v1022_v19 }
 0x2c3   : > { %1151 = vst [vmem:[%s1985_s23 + $0x2b8] sm:$0xff] %v1023_v22 }
 0x2c4   : > { %1152 = vst [vmem:[%s1985_s23 + $0x2c0] sm:$0xff] %v1024_v27 }
 0x2c5   : > { %1153 = vst [vmem:[%s1985_s23 + $0x2c8] sm:$0xff] %v1025_v34 }
 0x2c6   : > { %1154 = vst [vmem:[%s1985_s23 + $0x2d0] sm:$0xff] %v1026_v51 }
 0x2c7   : > { %1155 = vst [vmem:[%s1985_s23 + $0x2d8] sm:$0xff] %v1027_v6 }
 0x2c8   : > { %1156 = vst [vmem:[%s1985_s23 + $0x2e0] sm:$0xff] %v1028_v21 }
 0x2c9   : > { %1157 = vst [vmem:[%s1985_s23 + $0x2e8] sm:$0xff] %v1029_v37 }
 0x2ca   : > { %1158 = vst [vmem:[%s1985_s23 + $0x2f0] sm:$0xff] %v1030_v53 }
 0x2cb   : > { %1159 = vst [vmem:[%s1985_s23 + $0x2f8] sm:$0xff] %v1031_v56 }
 0x2cc   : > { %1176 = vst [vmem:[%s1985_s23 + $0x380] sm:$0xff] %v1048_v25 }
 0x2cd   : > { %1177 = vst [vmem:[%s1985_s23 + $0x388] sm:$0xff] %v1049_v16 }
 0x2ce   : > { %1178 = vst [vmem:[%s1985_s23 + $0x390] sm:$0xff] %v1050_v3 }
 0x2cf   : > { %1179 = vst [vmem:[%s1985_s23 + $0x398] sm:$0xff] %v1051_v35 }
 0x2d0   : > { %1180 = vst [vmem:[%s1985_s23 + $0x3a0] sm:$0xff] %v1052_v39 }
 0x2d1   : > { %1181 = vst [vmem:[%s1985_s23 + $0x3a8] sm:$0xff] %v1053_v41 }
 0x2d2   : > { %1182 = vst [vmem:[%s1985_s23 + $0x3b0] sm:$0xff] %v1054_v45 }
 0x2d3   : > { %1183 = vst [vmem:[%s1985_s23 + $0x3b8] sm:$0xff] %v1055_v46 }
 0x2d4   : > { %1184 = vst [vmem:[%s1985_s23 + $0x3c0] sm:$0xff] %v1056_v50 }
 0x2d5   : > { %1185 = vst [vmem:[%s1985_s23 + $0x3c8] sm:$0xff] %v1057_v38 }
 0x2d6   : > { %1186 = vst [vmem:[%s1985_s23 + $0x3d0] sm:$0xff] %v1058_v59 }
 0x2d7   : > { %1187 = vst [vmem:[%s1985_s23 + $0x3d8] sm:$0xff] %v1059_v0 }
 0x2d8   : > { %1188 = vst [vmem:[%s1985_s23 + $0x3e0] sm:$0xff] %v1060_v47 }
 0x2d9   : > { %1189 = vst [vmem:[%s1985_s23 + $0x3e8] sm:$0xff] %v1061_v52 }
 0x2da   : > { %1190 = vst [vmem:[%s1985_s23 + $0x3f0] sm:$0xff] %v1062_v44 }
 0x2db   : > { %1191 = vst [vmem:[%s1985_s23 + $0x3f8] sm:$0xff] %v1063_v62 }
 0x2dc PF: > { %s15_s15 = sadd.s32 1, %s1517_s15  }
 0x2dd   : > { %p12_p4 = scmp.ge.s32.totalorder %s15_s15, 4  }
 0x2df   :  { %14 = sbr.rel (!%p12_p4) target bundleno = 1 (0x1), region = 74 }

</bundles_post_ra>
